<compile_context>
chip_gen: v5e
topology: v5e:2x2
jax: 0.10.0
libtpu: 0.0.40
codegen_flags: <defaults>
</compile_context>

<pallas_src>
import functools

import jax
import jax.numpy as jnp
from jax.experimental import pallas as pl
from jax.experimental.pallas import tpu as pltpu

_EPS = 1e-5


def _shift_lanes(arr, s):
    """t[..., f] = arr[..., f + s], zero-filled outside [0, n)."""
    n = arr.shape[-1]
    if s == 0:
        return arr
    if abs(s) >= n:
        return jnp.zeros_like(arr)
    if s > 0:
        return jnp.concatenate(
            [arr[..., s:], jnp.zeros_like(arr[..., :s])], axis=-1)
    k = -s
    return jnp.concatenate(
        [jnp.zeros_like(arr[..., :k]), arr[..., :-k]], axis=-1)


def _ema_kernel(x_ref, p_ref, e_ref, w1_ref, wc_ref, sg_ref, pv_ref, out_ref,
                *, h, w):
    rows, hw_len = x_ref.shape
    x = x_ref[...]                                    # (rows, HW) f32, lane-dense

    pv = pv_ref[...]                                  # (rows, 4): [b1, gamma, beta, b3]
    b1, gamma, beta, b3 = pv[:, 0:1], pv[:, 1:2], pv[:, 2:3], pv[:, 3:4]

    # ---- pool_h / pool_w as one MXU matmul with a constant pooling matrix --
    pooled = jnp.dot(x, p_ref[...], preferred_element_type=jnp.float32)   # (rows, h+w)

    # ---- shared 1x1 conv (block-diagonal over the group tile) + sigmoid ----
    sig = jax.nn.sigmoid(
        jnp.dot(w1_ref[...], pooled, preferred_element_type=jnp.float32) + b1)

    # ---- expand sig_h over columns / sig_w over rows with one 0/1 matmul ---
    gates = jnp.dot(sig, e_ref[...], preferred_element_type=jnp.float32)  # (rows, 2*HW)
    gate_h = gates[:, :hw_len]
    gate_w = gates[:, hw_len:]

    # ---- gated features + per-channel GroupNorm (one channel per GN group) -
    x1p = x * gate_h * gate_w
    mu = jnp.mean(x1p, axis=1, keepdims=True)
    diff = x1p - mu
    var = jnp.mean(diff * diff, axis=1, keepdims=True)
    x1 = diff * jax.lax.rsqrt(var + _EPS) * gamma + beta                  # (rows, HW)

    # ---- 3x3 conv (stride 1, pad 1): 9 lane-shifted taps -> one matmul -----
    col = jax.lax.broadcasted_iota(jnp.int32, (1, hw_len), 1) % w
    valid_l = col >= 1              # output column valid for dx = -1
    valid_r = col <= (w - 2)        # output column valid for dx = +1
    taps = []
    for dy in (-1, 0, 1):
        for dx in (-1, 0, 1):
            t = _shift_lanes(x, dy * w + dx)
            if dx == -1:
                t = jnp.where(valid_l, t, 0.0)
            elif dx == 1:
                t = jnp.where(valid_r, t, 0.0)
            taps.append(t)
    stacked = jnp.concatenate(taps, axis=0)                               # (9*rows, HW)
    x2 = jnp.dot(wc_ref[...], stacked, preferred_element_type=jnp.float32) + b3

    # ---- per-group channel softmax of the spatial means --------------------
    # Softmax is shift-invariant within each group, so subtracting the
    # tile-wide max is exact and keeps exp() stable without any relayout.
    sg = sg_ref[...]                                   # (rows, rows) 0/1 group-sum matrix
    m1 = jnp.mean(x1, axis=1, keepdims=True)           # (rows, 1)
    m2 = jnp.mean(x2, axis=1, keepdims=True)
    e1 = jnp.exp(m1 - jnp.max(m1, axis=0, keepdims=True))
    e2 = jnp.exp(m2 - jnp.max(m2, axis=0, keepdims=True))
    den = jnp.dot(sg, jnp.concatenate([e1, e2], axis=1),
                  preferred_element_type=jnp.float32)  # (rows, 2) per-group exp sums
    p1 = e1 / den[:, 0:1]
    p2 = e2 / den[:, 1:2]

    # ---- softmax-weighted channel sums, broadcast to every row of a group --
    wt = jnp.dot(sg, p1 * x2 + p2 * x1, preferred_element_type=jnp.float32)
    out_ref[...] = (x * jax.nn.sigmoid(wt)).astype(out_ref.dtype)


def _pick_bg_tile(bg, cg, max_rows=512):
    """Largest divisor of bg giving >=2 grid steps and sublane-aligned rows."""
    cands = [t for t in range(1, bg) if bg % t == 0
             and (t * cg) % 8 == 0 and t * cg <= max_rows]
    if cands:
        return max(cands)
    return bg   # single full-extent block is always a legal BlockSpec


def ema_forward(x, params, groups):
    b, c, h, w = x.shape
    assert c % groups == 0
    cg = c // groups
    bg = b * groups
    hw_len = h * w
    bg_tile = _pick_bg_tile(bg, cg)
    rows = bg_tile * cg

    # Contiguous (free) reshape to a lane-dense 2-D slab; no host-side padding.
    x_flat = x.reshape(bg * cg, hw_len).astype(jnp.float32)

    # Constant pooling / gate-expansion matrices (folded under jit).
    frow = jnp.arange(hw_len) // w
    fcol = jnp.arange(hw_len) % w
    onehot_h = (frow[:, None] == jnp.arange(h)[None, :]).astype(jnp.float32)  # (HW, h)
    onehot_w = (fcol[:, None] == jnp.arange(w)[None, :]).astype(jnp.float32)  # (HW, w)
    p_mat = jnp.concatenate([onehot_h / w, onehot_w / h], axis=1)             # (HW, h+w)
    e_mat = jnp.zeros((h + w, 2 * hw_len), jnp.float32)
    e_mat = e_mat.at[:h, :hw_len].set(onehot_h.T)
    e_mat = e_mat.at[h:, hw_len:].set(onehot_w.T)                             # (h+w, 2*HW)

    # Block-diagonal weights shared by every group in a tile.
    eye_t = jnp.eye(bg_tile, dtype=jnp.float32)
    w1_bd = jnp.kron(eye_t, params["w1"].astype(jnp.float32))                 # (rows, rows)
    # OIHW -> (tap = ky*3+kx, O, I), matching the in-kernel tap ordering.
    w3_taps = jnp.transpose(params["w3"].astype(jnp.float32),
                            (2, 3, 0, 1)).reshape(9, cg, cg)
    wc_bd = jnp.concatenate([jnp.kron(eye_t, w3_taps[t]) for t in range(9)],
                            axis=1)                                           # (rows, 9*rows)
    sg_mat = jnp.kron(eye_t, jnp.ones((cg, cg), jnp.float32))                 # (rows, rows)
    pv_rows = jnp.tile(
        jnp.stack([params["b1"], params["gamma"], params["beta"], params["b3"]],
                  axis=1).astype(jnp.float32), (bg_tile, 1))                  # (rows, 4)

    grid = (bg // bg_tile,)
    kernel = functools.partial(_ema_kernel, h=h, w=w)

    out = pl.pallas_call(
        kernel,
        out_shape=jax.ShapeDtypeStruct((bg * cg, hw_len), jnp.float32),
        grid=grid,
        in_specs=[
            pl.BlockSpec((rows, hw_len), lambda i: (i, 0)),
            pl.BlockSpec((hw_len, h + w), lambda i: (0, 0)),
            pl.BlockSpec((h + w, 2 * hw_len), lambda i: (0, 0)),
            pl.BlockSpec((rows, rows), lambda i: (0, 0)),
            pl.BlockSpec((rows, 9 * rows), lambda i: (0, 0)),
            pl.BlockSpec((rows, rows), lambda i: (0, 0)),
            pl.BlockSpec((rows, 4), lambda i: (0, 0)),
        ],
        out_specs=pl.BlockSpec((rows, hw_len), lambda i: (i, 0)),
        compiler_params=pltpu.CompilerParams(
            dimension_semantics=("parallel",)),
    )(x_flat, p_mat, e_mat, w1_bd, wc_bd, sg_mat, pv_rows)

    return out.reshape(b, c, h, w)


def ema_reference(x, params, groups):
    """Pure-JAX reference matching the PyTorch EMA forward semantics."""
    b, c, h, w = x.shape
    cg = c // groups
    bg = b * groups
    gx = x.reshape(bg, cg, h, w)
    w1, b1 = params["w1"], params["b1"]
    gamma, beta = params["gamma"], params["beta"]
    w3, b3 = params["w3"], params["b3"]

    x_h = gx.mean(axis=3)                                   # (bg, cg, h)
    x_w = gx.mean(axis=2)                                   # (bg, cg, w)
    cat = jnp.concatenate([x_h, x_w], axis=2)               # (bg, cg, h+w)
    hw = jnp.einsum("oc,bcl->bol", w1, cat) + b1[None, :, None]
    sh = jax.nn.sigmoid(hw[:, :, :h])
    sw = jax.nn.sigmoid(hw[:, :, h:])
    x1p = gx * sh[:, :, :, None] * sw[:, :, None, :]
    mu = x1p.mean(axis=(2, 3), keepdims=True)
    var = ((x1p - mu) ** 2).mean(axis=(2, 3), keepdims=True)
    x1 = ((x1p - mu) / jnp.sqrt(var + 1e-5)
          * gamma[None, :, None, None] + beta[None, :, None, None])
    x2 = jax.lax.conv_general_dilated(
        gx, w3, window_strides=(1, 1), padding="SAME",
        dimension_numbers=("NCHW", "OIHW", "NCHW")) + b3[None, :, None, None]
    p1 = jax.nn.softmax(x1.mean(axis=(2, 3)), axis=1)       # (bg, cg)
    p2 = jax.nn.softmax(x2.mean(axis=(2, 3)), axis=1)
    wt = (jnp.einsum("bc,bchw->bhw", p1, x2)
          + jnp.einsum("bc,bchw->bhw", p2, x1))
    out = gx * jax.nn.sigmoid(wt)[:, None]
    return out.reshape(b, c, h, w)


if __name__ == "__main__":
    b, c, h, w = 2, 32, 16, 16
    groups = 8
    cg = c // groups

    key = jax.random.PRNGKey(0)
    kx, k1, k2, k3, k4, k5, k6 = jax.random.split(key, 7)
    x = jax.random.normal(kx, (b, c, h, w), jnp.float32)
    params = {
        "w1": 0.3 * jax.random.normal(k1, (cg, cg), jnp.float32),
        "b1": 0.1 * jax.random.normal(k2, (cg,), jnp.float32),
        "gamma": 1.0 + 0.1 * jax.random.normal(k3, (cg,), jnp.float32),
        "beta": 0.1 * jax.random.normal(k4, (cg,), jnp.float32),
        "w3": 0.2 * jax.random.normal(k5, (cg, cg, 3, 3), jnp.float32),
        "b3": 0.1 * jax.random.normal(k6, (cg,), jnp.float32),
    }

    ema_fn = jax.jit(functools.partial(ema_forward, groups=groups))
    out = jax.block_until_ready(ema_fn(x, params))
    ref = jax.block_until_ready(ema_reference(x, params, groups))
    assert out.shape == (b, c, h, w)
    # Tolerance leaves headroom for MXU matmul rounding vs the XLA reference
    # path; genuine logic errors produce >1e-1 deviations.
    err = float(jnp.max(jnp.abs(out - ref)))
    assert err < 1e-2, f"max abs err {err}"
    print("KERNEL_OK")
</pallas_src>

<mosaic_0001>
module attributes {stable_mosaic.version = 11 : i64} {
  func.func @_ema_kernel(%arg0: i32, %arg1: memref<32x256xf32, #tpu.memory_space<vmem>>, %arg2: memref<256x32xf32, #tpu.memory_space<vmem>>, %arg3: memref<32x512xf32, #tpu.memory_space<vmem>>, %arg4: memref<32x32xf32, #tpu.memory_space<vmem>>, %arg5: memref<32x288xf32, #tpu.memory_space<vmem>>, %arg6: memref<32x32xf32, #tpu.memory_space<vmem>>, %arg7: memref<32x4xf32, #tpu.memory_space<vmem>>, %arg8: memref<32x256xf32, #tpu.memory_space<vmem>>) attributes {dimension_semantics = [#tpu.dimension_semantics<parallel>], iteration_bounds = array<i64: 2>, scalar_prefetch = 0 : i64, scratch_operands = 0 : i64, tpu.core_type = #tpu.core_type<tc>, window_params = [{transform_indices = @transform_0, window_bounds = array<i64: 32, 256>}, {pipeline_mode = #tpu.pipeline_mode<synchronous>, transform_indices = @transform_1, window_bounds = array<i64: 256, 32>}, {pipeline_mode = #tpu.pipeline_mode<synchronous>, transform_indices = @transform_2, window_bounds = array<i64: 32, 512>}, {pipeline_mode = #tpu.pipeline_mode<synchronous>, transform_indices = @transform_3, window_bounds = array<i64: 32, 32>}, {pipeline_mode = #tpu.pipeline_mode<synchronous>, transform_indices = @transform_4, window_bounds = array<i64: 32, 288>}, {pipeline_mode = #tpu.pipeline_mode<synchronous>, transform_indices = @transform_5, window_bounds = array<i64: 32, 32>}, {pipeline_mode = #tpu.pipeline_mode<synchronous>, transform_indices = @transform_6, window_bounds = array<i64: 32, 4>}, {transform_indices = @transform_7, window_bounds = array<i64: 32, 256>}]} {
    %c0 = arith.constant 0 : index
    %c0_0 = arith.constant 0 : index
    %0 = vector.load %arg1[%c0, %c0_0] : memref<32x256xf32, #tpu.memory_space<vmem>>, vector<32x256xf32>
    %c0_1 = arith.constant 0 : index
    %c0_2 = arith.constant 0 : index
    %1 = vector.load %arg7[%c0_1, %c0_2] : memref<32x4xf32, #tpu.memory_space<vmem>>, vector<32x4xf32>
    %2 = vector.extract_strided_slice %1 {offsets = [0, 0], sizes = [32, 1], strides = [1, 1]} : vector<32x4xf32> to vector<32x1xf32>
    %3 = vector.extract_strided_slice %1 {offsets = [0, 1], sizes = [32, 1], strides = [1, 1]} : vector<32x4xf32> to vector<32x1xf32>
    %4 = vector.extract_strided_slice %1 {offsets = [0, 2], sizes = [32, 1], strides = [1, 1]} : vector<32x4xf32> to vector<32x1xf32>
    %5 = vector.extract_strided_slice %1 {offsets = [0, 3], sizes = [32, 1], strides = [1, 1]} : vector<32x4xf32> to vector<32x1xf32>
    %c0_3 = arith.constant 0 : index
    %c0_4 = arith.constant 0 : index
    %6 = vector.load %arg2[%c0_3, %c0_4] : memref<256x32xf32, #tpu.memory_space<vmem>>, vector<256x32xf32>
    %cst = arith.constant dense<0.000000e+00> : vector<32x32xf32>
    %7 = tpu.matmul %0, %6, %cst {dimension_numbers = #tpu.dot_dimension_numbers<[1], [0], [0], [1], [0, 0, 1, 1], [], []>} : vector<32x256xf32>, vector<256x32xf32>, vector<32x32xf32> -> vector<32x32xf32>
    %c0_5 = arith.constant 0 : index
    %c0_6 = arith.constant 0 : index
    %8 = vector.load %arg4[%c0_5, %c0_6] : memref<32x32xf32, #tpu.memory_space<vmem>>, vector<32x32xf32>
    %cst_7 = arith.constant dense<0.000000e+00> : vector<32x32xf32>
    %9 = tpu.matmul %8, %7, %cst_7 {dimension_numbers = #tpu.dot_dimension_numbers<[1], [0], [0], [1], [0, 0, 1, 1], [], []>} : vector<32x32xf32>, vector<32x32xf32>, vector<32x32xf32> -> vector<32x32xf32>
    %10 = vector.broadcast %2 : vector<32x1xf32> to vector<32x32xf32>
    %11 = arith.addf %9, %10 : vector<32x32xf32>
    %12 = arith.negf %11 : vector<32x32xf32>
    %13 = math.exp %12 : vector<32x32xf32>
    %cst_8 = arith.constant 1.000000e+00 : f32
    %14 = vector.broadcast %cst_8 : f32 to vector<32x32xf32>
    %15 = arith.addf %14, %13 : vector<32x32xf32>
    %16 = arith.divf %14, %15 : vector<32x32xf32>
    %c0_9 = arith.constant 0 : index
    %c0_10 = arith.constant 0 : index
    %17 = vector.load %arg3[%c0_9, %c0_10] : memref<32x512xf32, #tpu.memory_space<vmem>>, vector<32x512xf32>
    %cst_11 = arith.constant dense<0.000000e+00> : vector<32x512xf32>
    %18 = tpu.matmul %16, %17, %cst_11 {dimension_numbers = #tpu.dot_dimension_numbers<[1], [0], [0], [1], [0, 0, 1, 1], [], []>} : vector<32x32xf32>, vector<32x512xf32>, vector<32x512xf32> -> vector<32x512xf32>
    %19 = vector.extract_strided_slice %18 {offsets = [0, 0], sizes = [32, 256], strides = [1, 1]} : vector<32x512xf32> to vector<32x256xf32>
    %20 = vector.extract_strided_slice %18 {offsets = [0, 256], sizes = [32, 256], strides = [1, 1]} : vector<32x512xf32> to vector<32x256xf32>
    %21 = arith.mulf %0, %19 : vector<32x256xf32>
    %22 = arith.mulf %21, %20 : vector<32x256xf32>
    %cst_12 = arith.constant dense<0.000000e+00> : vector<32xf32>
    %23 = vector.multi_reduction <add>, %22, %cst_12 [1] : vector<32x256xf32> to vector<32xf32>
    %24 = vector.shape_cast %23 : vector<32xf32> to vector<32x1xf32>
    %cst_13 = arith.constant 2.560000e+02 : f32
    %25 = vector.broadcast %cst_13 : f32 to vector<32x1xf32>
    %26 = arith.divf %24, %25 : vector<32x1xf32>
    %27 = vector.broadcast %26 : vector<32x1xf32> to vector<32x256xf32>
    %28 = arith.subf %22, %27 : vector<32x256xf32>
    %29 = arith.mulf %28, %28 : vector<32x256xf32>
    %cst_14 = arith.constant dense<0.000000e+00> : vector<32xf32>
    %30 = vector.multi_reduction <add>, %29, %cst_14 [1] : vector<32x256xf32> to vector<32xf32>
    %31 = vector.shape_cast %30 : vector<32xf32> to vector<32x1xf32>
    %cst_15 = arith.constant 2.560000e+02 : f32
    %32 = vector.broadcast %cst_15 : f32 to vector<32x1xf32>
    %33 = arith.divf %31, %32 : vector<32x1xf32>
    %cst_16 = arith.constant 9.99999974E-6 : f32
    %34 = vector.broadcast %cst_16 : f32 to vector<32x1xf32>
    %35 = arith.addf %33, %34 : vector<32x1xf32>
    %36 = math.rsqrt %35 : vector<32x1xf32>
    %37 = vector.broadcast %36 : vector<32x1xf32> to vector<32x256xf32>
    %38 = arith.mulf %28, %37 : vector<32x256xf32>
    %39 = vector.broadcast %3 : vector<32x1xf32> to vector<32x256xf32>
    %40 = arith.mulf %38, %39 : vector<32x256xf32>
    %41 = vector.broadcast %4 : vector<32x1xf32> to vector<32x256xf32>
    %42 = arith.addf %40, %41 : vector<32x256xf32>
    %43 = tpu.iota {dimensions = array<i32: 1>} : vector<1x256xi32>
    %c16_i32 = arith.constant 16 : i32
    %c0_i32 = arith.constant 0 : i32
    %44 = arith.cmpi eq, %c16_i32, %c0_i32 : i32
    %c1_i32 = arith.constant 1 : i32
    %45 = arith.select %44, %c1_i32, %c16_i32 : i32
    %46 = vector.broadcast %45 : i32 to vector<1x256xi32>
    %47 = arith.remsi %43, %46 : vector<1x256xi32>
    %c0_i32_17 = arith.constant 0 : i32
    %48 = vector.broadcast %c0_i32_17 : i32 to vector<1x256xi32>
    %49 = arith.cmpi ne, %47, %48 : vector<1x256xi32>
    %c0_i32_18 = arith.constant 0 : i32
    %50 = vector.broadcast %c0_i32_18 : i32 to vector<1x256xi32>
    %51 = arith.cmpi slt, %47, %50 : vector<1x256xi32>
    %c0_i32_19 = arith.constant 0 : i32
    %52 = arith.cmpi slt, %45, %c0_i32_19 : i32
    %53 = vector.broadcast %52 : i1 to vector<1x256xi1>
    %54 = vector.broadcast %53 : vector<1x256xi1> to vector<1x256xi1>
    %55 = arith.xori %51, %54 : vector<1x256xi1>
    %56 = arith.andi %55, %49 : vector<1x256xi1>
    %57 = vector.broadcast %45 : i32 to vector<1x256xi32>
    %58 = arith.addi %47, %57 : vector<1x256xi32>
    %59 = arith.select %56, %58, %47 : vector<1x256xi1>, vector<1x256xi32>
    %c1_i32_20 = arith.constant 1 : i32
    %60 = vector.broadcast %c1_i32_20 : i32 to vector<1x256xi32>
    %61 = arith.cmpi sge, %59, %60 : vector<1x256xi32>
    %c14_i32 = arith.constant 14 : i32
    %62 = vector.broadcast %c14_i32 : i32 to vector<1x256xi32>
    %63 = arith.cmpi sle, %59, %62 : vector<1x256xi32>
    %cst_21 = arith.constant 0.000000e+00 : f32
    %64 = vector.broadcast %cst_21 : f32 to vector<32x17xf32>
    %65 = vector.extract_strided_slice %0 {offsets = [0, 0], sizes = [32, 239], strides = [1, 1]} : vector<32x256xf32> to vector<32x239xf32>
    %66 = tpu.concatenate %64, %65 in 1 : vector<32x17xf32>, vector<32x239xf32> -> vector<32x256xf32>
    %cst_22 = arith.constant 0.000000e+00 : f32
    %67 = vector.shape_cast %61 : vector<1x256xi1> to vector<1x256xi1>
    %68 = vector.broadcast %67 : vector<1x256xi1> to vector<32x256xi1>
    %69 = vector.broadcast %cst_22 : f32 to vector<32x256xf32>
    %70 = arith.select %68, %66, %69 : vector<32x256xi1>, vector<32x256xf32>
    %cst_23 = arith.constant 0.000000e+00 : f32
    %71 = vector.broadcast %cst_23 : f32 to vector<32x16xf32>
    %72 = vector.extract_strided_slice %0 {offsets = [0, 0], sizes = [32, 240], strides = [1, 1]} : vector<32x256xf32> to vector<32x240xf32>
    %73 = tpu.concatenate %71, %72 in 1 : vector<32x16xf32>, vector<32x240xf32> -> vector<32x256xf32>
    %cst_24 = arith.constant 0.000000e+00 : f32
    %74 = vector.broadcast %cst_24 : f32 to vector<32x15xf32>
    %75 = vector.extract_strided_slice %0 {offsets = [0, 0], sizes = [32, 241], strides = [1, 1]} : vector<32x256xf32> to vector<32x241xf32>
    %76 = tpu.concatenate %74, %75 in 1 : vector<32x15xf32>, vector<32x241xf32> -> vector<32x256xf32>
    %cst_25 = arith.constant 0.000000e+00 : f32
    %77 = vector.shape_cast %63 : vector<1x256xi1> to vector<1x256xi1>
    %78 = vector.broadcast %77 : vector<1x256xi1> to vector<32x256xi1>
    %79 = vector.broadcast %cst_25 : f32 to vector<32x256xf32>
    %80 = arith.select %78, %76, %79 : vector<32x256xi1>, vector<32x256xf32>
    %cst_26 = arith.constant 0.000000e+00 : f32
    %81 = vector.broadcast %cst_26 : f32 to vector<32x1xf32>
    %82 = vector.extract_strided_slice %0 {offsets = [0, 0], sizes = [32, 255], strides = [1, 1]} : vector<32x256xf32> to vector<32x255xf32>
    %83 = tpu.concatenate %81, %82 in 1 : vector<32x1xf32>, vector<32x255xf32> -> vector<32x256xf32>
    %cst_27 = arith.constant 0.000000e+00 : f32
    %84 = vector.shape_cast %61 : vector<1x256xi1> to vector<1x256xi1>
    %85 = vector.broadcast %84 : vector<1x256xi1> to vector<32x256xi1>
    %86 = vector.broadcast %cst_27 : f32 to vector<32x256xf32>
    %87 = arith.select %85, %83, %86 : vector<32x256xi1>, vector<32x256xf32>
    %88 = vector.extract_strided_slice %0 {offsets = [0, 1], sizes = [32, 255], strides = [1, 1]} : vector<32x256xf32> to vector<32x255xf32>
    %cst_28 = arith.constant 0.000000e+00 : f32
    %89 = vector.broadcast %cst_28 : f32 to vector<32x1xf32>
    %90 = tpu.concatenate %88, %89 in 1 : vector<32x255xf32>, vector<32x1xf32> -> vector<32x256xf32>
    %cst_29 = arith.constant 0.000000e+00 : f32
    %91 = vector.shape_cast %63 : vector<1x256xi1> to vector<1x256xi1>
    %92 = vector.broadcast %91 : vector<1x256xi1> to vector<32x256xi1>
    %93 = vector.broadcast %cst_29 : f32 to vector<32x256xf32>
    %94 = arith.select %92, %90, %93 : vector<32x256xi1>, vector<32x256xf32>
    %95 = vector.extract_strided_slice %0 {offsets = [0, 15], sizes = [32, 241], strides = [1, 1]} : vector<32x256xf32> to vector<32x241xf32>
    %cst_30 = arith.constant 0.000000e+00 : f32
    %96 = vector.broadcast %cst_30 : f32 to vector<32x15xf32>
    %97 = tpu.concatenate %95, %96 in 1 : vector<32x241xf32>, vector<32x15xf32> -> vector<32x256xf32>
    %cst_31 = arith.constant 0.000000e+00 : f32
    %98 = vector.shape_cast %61 : vector<1x256xi1> to vector<1x256xi1>
    %99 = vector.broadcast %98 : vector<1x256xi1> to vector<32x256xi1>
    %100 = vector.broadcast %cst_31 : f32 to vector<32x256xf32>
    %101 = arith.select %99, %97, %100 : vector<32x256xi1>, vector<32x256xf32>
    %102 = vector.extract_strided_slice %0 {offsets = [0, 16], sizes = [32, 240], strides = [1, 1]} : vector<32x256xf32> to vector<32x240xf32>
    %cst_32 = arith.constant 0.000000e+00 : f32
    %103 = vector.broadcast %cst_32 : f32 to vector<32x16xf32>
    %104 = tpu.concatenate %102, %103 in 1 : vector<32x240xf32>, vector<32x16xf32> -> vector<32x256xf32>
    %105 = vector.extract_strided_slice %0 {offsets = [0, 17], sizes = [32, 239], strides = [1, 1]} : vector<32x256xf32> to vector<32x239xf32>
    %cst_33 = arith.constant 0.000000e+00 : f32
    %106 = vector.broadcast %cst_33 : f32 to vector<32x17xf32>
    %107 = tpu.concatenate %105, %106 in 1 : vector<32x239xf32>, vector<32x17xf32> -> vector<32x256xf32>
    %cst_34 = arith.constant 0.000000e+00 : f32
    %108 = vector.shape_cast %63 : vector<1x256xi1> to vector<1x256xi1>
    %109 = vector.broadcast %108 : vector<1x256xi1> to vector<32x256xi1>
    %110 = vector.broadcast %cst_34 : f32 to vector<32x256xf32>
    %111 = arith.select %109, %107, %110 : vector<32x256xi1>, vector<32x256xf32>
    %112 = tpu.concatenate %70, %73, %80, %87, %0, %94, %101, %104, %111 in 0 : vector<32x256xf32>, vector<32x256xf32>, vector<32x256xf32>, vector<32x256xf32>, vector<32x256xf32>, vector<32x256xf32>, vector<32x256xf32>, vector<32x256xf32>, vector<32x256xf32> -> vector<288x256xf32>
    %c0_35 = arith.constant 0 : index
    %c0_36 = arith.constant 0 : index
    %113 = vector.load %arg5[%c0_35, %c0_36] : memref<32x288xf32, #tpu.memory_space<vmem>>, vector<32x288xf32>
    %cst_37 = arith.constant dense<0.000000e+00> : vector<32x256xf32>
    %114 = tpu.matmul %113, %112, %cst_37 {dimension_numbers = #tpu.dot_dimension_numbers<[1], [0], [0], [1], [0, 0, 1, 1], [], []>} : vector<32x288xf32>, vector<288x256xf32>, vector<32x256xf32> -> vector<32x256xf32>
    %115 = vector.broadcast %5 : vector<32x1xf32> to vector<32x256xf32>
    %116 = arith.addf %114, %115 : vector<32x256xf32>
    %c0_38 = arith.constant 0 : index
    %c0_39 = arith.constant 0 : index
    %117 = vector.load %arg6[%c0_38, %c0_39] : memref<32x32xf32, #tpu.memory_space<vmem>>, vector<32x32xf32>
    %cst_40 = arith.constant dense<0.000000e+00> : vector<32xf32>
    %118 = vector.multi_reduction <add>, %42, %cst_40 [1] : vector<32x256xf32> to vector<32xf32>
    %119 = vector.shape_cast %118 : vector<32xf32> to vector<32x1xf32>
    %cst_41 = arith.constant 2.560000e+02 : f32
    %120 = vector.broadcast %cst_41 : f32 to vector<32x1xf32>
    %121 = arith.divf %119, %120 : vector<32x1xf32>
    %cst_42 = arith.constant dense<0.000000e+00> : vector<32xf32>
    %122 = vector.multi_reduction <add>, %116, %cst_42 [1] : vector<32x256xf32> to vector<32xf32>
    %123 = vector.shape_cast %122 : vector<32xf32> to vector<32x1xf32>
    %cst_43 = arith.constant 2.560000e+02 : f32
    %124 = vector.broadcast %cst_43 : f32 to vector<32x1xf32>
    %125 = arith.divf %123, %124 : vector<32x1xf32>
    %cst_44 = arith.constant dense<0xFF800000> : vector<1xf32>
    %126 = vector.multi_reduction <maximumf>, %121, %cst_44 [0] : vector<32x1xf32> to vector<1xf32>
    %127 = vector.shape_cast %126 : vector<1xf32> to vector<1x1xf32>
    %128 = vector.broadcast %127 : vector<1x1xf32> to vector<32x1xf32>
    %129 = arith.subf %121, %128 : vector<32x1xf32>
    %130 = math.exp %129 : vector<32x1xf32>
    %cst_45 = arith.constant dense<0xFF800000> : vector<1xf32>
    %131 = vector.multi_reduction <maximumf>, %125, %cst_45 [0] : vector<32x1xf32> to vector<1xf32>
    %132 = vector.shape_cast %131 : vector<1xf32> to vector<1x1xf32>
    %133 = vector.broadcast %132 : vector<1x1xf32> to vector<32x1xf32>
    %134 = arith.subf %125, %133 : vector<32x1xf32>
    %135 = math.exp %134 : vector<32x1xf32>
    %136 = tpu.concatenate %130, %135 in 1 : vector<32x1xf32>, vector<32x1xf32> -> vector<32x2xf32>
    %cst_46 = arith.constant dense<0.000000e+00> : vector<32x2xf32>
    %137 = tpu.matmul %117, %136, %cst_46 {dimension_numbers = #tpu.dot_dimension_numbers<[1], [0], [0], [1], [0, 0, 1, 1], [], []>} : vector<32x32xf32>, vector<32x2xf32>, vector<32x2xf32> -> vector<32x2xf32>
    %138 = vector.extract_strided_slice %137 {offsets = [0, 0], sizes = [32, 1], strides = [1, 1]} : vector<32x2xf32> to vector<32x1xf32>
    %139 = arith.divf %130, %138 : vector<32x1xf32>
    %140 = vector.extract_strided_slice %137 {offsets = [0, 1], sizes = [32, 1], strides = [1, 1]} : vector<32x2xf32> to vector<32x1xf32>
    %141 = arith.divf %135, %140 : vector<32x1xf32>
    %142 = vector.broadcast %139 : vector<32x1xf32> to vector<32x256xf32>
    %143 = arith.mulf %142, %116 : vector<32x256xf32>
    %144 = vector.broadcast %141 : vector<32x1xf32> to vector<32x256xf32>
    %145 = arith.mulf %144, %42 : vector<32x256xf32>
    %146 = arith.addf %143, %145 : vector<32x256xf32>
    %cst_47 = arith.constant dense<0.000000e+00> : vector<32x256xf32>
    %147 = tpu.matmul %117, %146, %cst_47 {dimension_numbers = #tpu.dot_dimension_numbers<[1], [0], [0], [1], [0, 0, 1, 1], [], []>} : vector<32x32xf32>, vector<32x256xf32>, vector<32x256xf32> -> vector<32x256xf32>
    %148 = arith.negf %147 : vector<32x256xf32>
    %149 = math.exp %148 : vector<32x256xf32>
    %cst_48 = arith.constant 1.000000e+00 : f32
    %150 = vector.broadcast %cst_48 : f32 to vector<32x256xf32>
    %151 = arith.addf %150, %149 : vector<32x256xf32>
    %152 = arith.divf %150, %151 : vector<32x256xf32>
    %153 = arith.mulf %0, %152 : vector<32x256xf32>
    %c0_49 = arith.constant 0 : index
    %c0_50 = arith.constant 0 : index
    %154 = vector.load %arg8[%c0_49, %c0_50] : memref<32x256xf32, #tpu.memory_space<vmem>>, vector<32x256xf32>
    tpu.vector_store %arg8[%c0_49, %c0_50], %153 {strides = array<i32>} : memref<32x256xf32, #tpu.memory_space<vmem>>, vector<32x256xf32>,
    return
  }
  func.func @transform_0(%arg0: i32) -> (i32, i32) {
    %c0_i32 = arith.constant 0 : i32
    %c0_i32_0 = arith.constant 0 : i32
    return %arg0, %c0_i32 : i32, i32
  }
  func.func @transform_1(%arg0: i32) -> (i32, i32) {
    %c0_i32 = arith.constant 0 : i32
    %c0_i32_0 = arith.constant 0 : i32
    %c0_i32_1 = arith.constant 0 : i32
    return %c0_i32, %c0_i32_0 : i32, i32
  }
  func.func @transform_2(%arg0: i32) -> (i32, i32) {
    %c0_i32 = arith.constant 0 : i32
    %c0_i32_0 = arith.constant 0 : i32
    %c0_i32_1 = arith.constant 0 : i32
    return %c0_i32, %c0_i32_0 : i32, i32
  }
  func.func @transform_3(%arg0: i32) -> (i32, i32) {
    %c0_i32 = arith.constant 0 : i32
    %c0_i32_0 = arith.constant 0 : i32
    %c0_i32_1 = arith.constant 0 : i32
    return %c0_i32, %c0_i32_0 : i32, i32
  }
  func.func @transform_4(%arg0: i32) -> (i32, i32) {
    %c0_i32 = arith.constant 0 : i32
    %c0_i32_0 = arith.constant 0 : i32
    %c0_i32_1 = arith.constant 0 : i32
    return %c0_i32, %c0_i32_0 : i32, i32
  }
  func.func @transform_5(%arg0: i32) -> (i32, i32) {
    %c0_i32 = arith.constant 0 : i32
    %c0_i32_0 = arith.constant 0 : i32
    %c0_i32_1 = arith.constant 0 : i32
    return %c0_i32, %c0_i32_0 : i32, i32
  }
  func.func @transform_6(%arg0: i32) -> (i32, i32) {
    %c0_i32 = arith.constant 0 : i32
    %c0_i32_0 = arith.constant 0 : i32
    %c0_i32_1 = arith.constant 0 : i32
    return %c0_i32, %c0_i32_0 : i32, i32
  }
  func.func @transform_7(%arg0: i32) -> (i32, i32) {
    %c0_i32 = arith.constant 0 : i32
    %c0_i32_0 = arith.constant 0 : i32
    return %arg0, %c0_i32 : i32, i32
  }
}

</mosaic_0001>

<bundles_post_ra>
// kernel: ema_forward.1
= control target key start
LH: loop header
LB: loop body
LE: loop exit
PB: predicated region body
PF: predicated region fallthrough
CT: control target
= control target key end

     0   :  { %s2335_s24 = smov 0   ;;  %s3699_s0 = inlined_call_operand.vmem [shape: f32[64,256], index: 0, kind: input, shape index: {}]   ;;  %s3700_s1 = inlined_call_operand.vmem [shape: f32[256,32], index: 1, kind: input, shape index: {}]   ;;  %s3701_s2 = inlined_call_operand.vmem [shape: f32[32,512], index: 2, kind: input, shape index: {}]   ;;  %s3702_s3 = inlined_call_operand.vmem [shape: f32[32,32], index: 3, kind: input, shape index: {}]   ;;  %s3703_s4 = inlined_call_operand.vmem [shape: f32[32,288], index: 4, kind: input, shape index: {}]   ;;  %s3704_s5 = inlined_call_operand.vmem [shape: f32[32,32], index: 5, kind: input, shape index: {}]   ;;  %s3705_s6 = inlined_call_operand.vmem [shape: f32[32,4], index: 6, kind: input, shape index: {}]   ;;  %s3706_s7 = inlined_call_operand.vmem [shape: f32[64,256], index: 7, kind: output, shape index: {}]  }
   0x1 LB: > { %s1954_s25 = sadd.s32 4294967295, %s2280_s24   ;;  %p1958_p0 = scmp.ge.s32.totalorder %s2280_s24, 1  ;;  %s2280_s24 = sphi %s2335_s24, %s17_s24  }
   0x2   : > { %p239_p1 = scmp.lt.s32.totalorder %s2280_s24, 3 }
   0x4   : > { %p240_p2 = pnand %p1958_p0, %p239_p1 }
   0x6   : > { %243 = sbr.rel (%p240_p2) target bundleno = 1536 (0x600), region = 48 }
   0xb   : > { %v314_v0 = vld [vmem:[%s3700_s1 + $0x78] sm:$0xff]  ;;  %v313_v2 = vld [vmem:[%s3700_s1 + $0x70] sm:$0xff]  ;;  %v312_v4 = vld [vmem:[%s3700_s1 + $0x68] sm:$0xff]  ;;  %s1959_s14 = sshll.u32 %s1954_s25, 2  ;;  %v3707_v31 = vmov 0   ;;  %s2283_s16 = smov 112  }
   0xc   : > { %v330_v1 = vld [vmem:[%s3700_s1 + $0xf8] sm:$0xff]  ;;  %331 = vmatpush.msra.mxu0 %v314_v0  ;;  %v329_v3 = vld [vmem:[%s3700_s1 + $0xf0] sm:$0xff]  ;;  %v328_v5 = vld [vmem:[%s3700_s1 + $0xe8] sm:$0xff]  ;;  %p274_p3 = scmp.lt.s32.totalorder %s1959_s14, 7  ;;  %2135 = vset.pattern.permute.xlu1 %v3707_v31  ;;  %s2284_s19 = smov 113   ;;  %vm413_vm0 = vcmask 261120  }
   0xd   : > { %360 = vmatpush.msra.mxu1 %v330_v1  ;;  %v311_v6 = vld [vmem:[%s3700_s1 + $0x60] sm:$0xff]  ;;  %v310_v8 = vld [vmem:[%s3700_s1 + $0x58] sm:$0xff]  ;;  %v309_v10 = vld [vmem:[%s3700_s1 + $0x50] sm:$0xff]  ;;  %2134 = vset.pattern.permute.xlu0 %v3707_v31  ;;  %s2285_s20 = smov 127   ;;  %s2286_s21 = smov 1   ;;  %vm1106_vm1 = vcmask 924672  }
   0xe   : > { %332 = vmatpush.msra.mxu0 %v313_v2  ;;  %v327_v7 = vld [vmem:[%s3700_s1 + $0xe0] sm:$0xff]  ;;  %v326_v9 = vld [vmem:[%s3700_s1 + $0xd8] sm:$0xff]  ;;  %v325_v11 = vld [vmem:[%s3700_s1 + $0xd0] sm:$0xff]  ;;  %s3751_s14 = smov (!%p274_p3, %s1959_s14), 7  ;;  %s2287_s23 = smov 15   ;;  %vm1065_vm2 = vcmask 1039360  }
   0xf   : > { %361 = vmatpush.msra.mxu1 %v329_v3  ;;  %v308_v12 = vld [vmem:[%s3700_s1 + $0x48] sm:$0xff]  ;;  %v307_v14 = vld [vmem:[%s3700_s1 + $0x40] sm:$0xff]  ;;  %v306_v16 = vld [vmem:[%s3700_s1 + $0x38] sm:$0xff]  ;;  %s2079_s13 = sshll.u32 %s3751_s14, 4  ;;  %s2288_s8 = smov 16   ;;  %vm1147_vm4 = vcmask 916480  }
  0x10   : > { %333 = vmatpush.msra.mxu0 %v312_v4  ;;  %v324_v13 = vld [vmem:[%s3700_s1 + $0xc8] sm:$0xff]  ;;  %v323_v15 = vld [vmem:[%s3700_s1 + $0xc0] sm:$0xff]  ;;  %v322_v17 = vld [vmem:[%s3700_s1 + $0xb8] sm:$0xff]  ;;  %s2446_s28 = scalar_lea.vmem %s3699_s0, %s2079_s13  ;;  %s2289_s11 = smov 17   ;;  %vm3718_vm8 = vcmask 7168   ;;  %vm1180_vm14 = vcmask 908288  }
  0x11   : > { %362 = vmatpush.msra.mxu1 %v328_v5  ;;  %v305_v18 = vld [vmem:[%s3700_s1 + $0x30] sm:$0xff]  ;;  %v304_v20 = vld [vmem:[%s3700_s1 + $0x28] sm:$0xff]  ;;  %v303_v22 = vld [vmem:[%s3700_s1 + $0x20] sm:$0xff]  ;;  %s2290_s12 = smov 111   ;;  %vm979_vm15 = vcmask 121856  }
  0x12   : > { %334 = vmatpush.msra.mxu0 %v311_v6  ;;  %v321_v19 = vld [vmem:[%s3700_s1 + $0xb0] sm:$0xff]  ;;  %v320_v21 = vld [vmem:[%s3700_s1 + $0xa8] sm:$0xff]  ;;  %v319_v23 = vld [vmem:[%s3700_s1 + $0xa0] sm:$0xff] }
  0x13   : > { %363 = vmatpush.msra.mxu1 %v327_v7  ;;  %v302_v24 = vld [vmem:[%s3700_s1 + $0x18] sm:$0xff]  ;;  %v301_v26 = vld [vmem:[%s3700_s1 + $0x10] sm:$0xff]  ;;  %v300_v29 = vld [vmem:[%s3700_s1 + $0x8] sm:$0xff] }
  0x14   : > { %335 = vmatpush.msra.mxu0 %v310_v8  ;;  %v318_v25 = vld [vmem:[%s3700_s1 + $0x98] sm:$0xff]  ;;  %v317_v27 = vld [vmem:[%s3700_s1 + $0x90] sm:$0xff]  ;;  %v316_v30 = vld [vmem:[%s3700_s1 + $0x88] sm:$0xff] }
  0x15   : > { %364 = vmatpush.msra.mxu1 %v326_v9  ;;  %v297_v28 = vld [vmem:[%s3705_s6 + $0x10] sm:$0xff]  ;;  %v299_v32 = vld [vmem:[%s3700_s1] sm:$0xff]  ;;  %v2460_v35 = vld [vmem:[%s2446_s28 + $0x8] sm:$0xff] }
  0x16   : > { %336 = vmatpush.msra.mxu0 %v309_v10  ;;  %v315_v33 = vld [vmem:[%s3700_s1 + $0x80] sm:$0xff]  ;;  %405 = vperm.xlu1 %2135, %v297_v28   ;;  %v298_v36 = vld [vmem:[%s3705_s6 + $0x18] sm:$0xff]  ;;  %v2468_v37 = vld [vmem:[%s2446_s28 + $0x10] sm:$0xff] }
  0x17   : > { %365 = vmatpush.msra.mxu1 %v325_v11  ;;  %v2457_v34 = vld [vmem:[%s2446_s28] sm:$0xff]  ;;  %v2471_v38 = vld [vmem:[%s2446_s28 + $0x18] sm:$0xff]  ;;  %v2479_v40 = vld [vmem:[%s2446_s28 + $0x28] sm:$0xff] }
  0x18   : > { %337 = vmatpush.msra.mxu0 %v308_v12  ;;  %3719 = vst [vmem:[#allocation2_spill] sm:$0xff] %v2471_v38  ;;  %v2476_v39 = vld [vmem:[%s2446_s28 + $0x20] sm:$0xff]  ;;  %v2484_v41 = vld [vmem:[%s2446_s28 + $0x30] sm:$0xff]  ;;  %v2487_v42 = vld [vmem:[%s2446_s28 + $0x38] sm:$0xff]  ;;  %v2141_v43 = vpack.i.bf16 %v2457_v34, %v2468_v37 }
  0x19   : > { %366 = vmatpush.msra.mxu1 %v324_v13  ;;  %3720 = vst [vmem:[#allocation3_spill] sm:$0xff] %v2479_v40  ;;  %v2496_v44 = vld [vmem:[%s3705_s6] sm:$0xff]  ;;  %v2136_v45 = vpack.i.bf16 %v2476_v39, %v2484_v41  ;;  %v296_v46 = vld [vmem:[%s3705_s6 + $0x8] sm:$0xff]  ;;  %v391_v61 = vld [vmem:[%s3702_s3 + $0x10] sm:$0xff]  ;;  %v2146_v3 = vpack.i.bf16 %v2479_v40, %v2487_v42 }
  0x1a   : > { %338 = vmatpush.msra.mxu0 %v307_v14  ;;  %3721 = vst [vmem:[#allocation4_spill] sm:$0xff] %v2487_v42  ;;  %395 = vperm.xlu0 %2134, %v2496_v44   ;;  %v389_v59 = vld [vmem:[%s3702_s3] sm:$0xff]  ;;  %v390_v60 = vld [vmem:[%s3702_s3 + $0x8] sm:$0xff]  ;;  %v392_v62 = vld [vmem:[%s3702_s3 + $0x18] sm:$0xff]  ;;  %v2151_v14 = vpack.i.bf16 %v2460_v35, %v2471_v38 }
  0x1b   : > { %367 = vmatpush.msra.mxu1 %v323_v15  ;;  %3722 = vst [vmem:[#allocation5_spill] sm:$0xff] %v2496_v44  ;;  %2137 = vrot.lane.b32.xlu2 %v2136_v45, %s2283_s16 }
  0x1c   : > { %339 = vmatpush.msra.mxu0 %v306_v16 }
  0x1d   : > { %368 = vmatpush.msra.mxu1 %v322_v17 }
  0x1e   : > { %340 = vmatpush.msra.mxu0 %v305_v18  ;;  %410 = vperm.xlu1 %2135, %v298_v36  }
  0x1f   : > { %369 = vmatpush.msra.mxu1 %v321_v19 }
  0x20   : > { %341 = vmatpush.msra.mxu0 %v304_v20 }
  0x21   : > { %370 = vmatpush.msra.mxu1 %v320_v21 }
  0x22   : > { %342 = vmatpush.msra.mxu0 %v303_v22  ;;  %400 = vperm.xlu0 %2134, %v296_v46  }
  0x23   : > { %371 = vmatpush.msra.mxu1 %v319_v23  ;;  %1145 = vrot.lane.b32.xlu2 %v2487_v42, %s2283_s16 }
  0x24   : > { %343 = vmatpush.msra.mxu0 %v302_v24 }
  0x25   : > { %372 = vmatpush.msra.mxu1 %v318_v25 }
  0x26   : > { %344 = vmatpush.msra.mxu0 %v301_v26  ;;  %2142 = vrot.lane.b32.xlu1 %v2141_v43, %s2283_s16 }
  0x27   : > { %373 = vmatpush.msra.mxu1 %v317_v27 }
  0x28   : > { %345 = vmatpush.msra.mxu0 %v300_v29 }
  0x29   : > { %374 = vmatpush.msra.mxu1 %v316_v30 }
  0x2a   : > { %346 = vmatpush.msra.mxu0 %v299_v32  ;;  %1141 = vrot.lane.b32.xlu0 %v2479_v40, %s2283_s16 }
  0x2b   : > { %375 = vmatpush.msra.mxu1 %v315_v33  ;;  %347 = vmatmul.f32.vlgmr.msra.gmra.mxu0 %v2457_v34 }
  0x2c   : > { %376 = vmatmul.f32.vlgmr.msra.gmra.mxu1 %v2460_v35  ;;  %1137 = vrot.lane.b32.xlu2 %v2471_v38, %s2283_s16 }
  0x2e   : > { %1102 = vrot.lane.b32.xlu1 %v2484_v41, %s2284_s19 }
  0x32   : > { %1133 = vrot.lane.b32.xlu0 %v2460_v35, %s2283_s16 }
  0x33   : > { %350 = vmatmul.f32.gmra.mxu0 %v2468_v37 }
  0x34   : > { %379 = vmatmul.f32.gmra.mxu1 %v2471_v38  ;;  %1104 = vrot.lane.b32.xlu2 %v2487_v42, %s2284_s19 }
  0x36   : > { %1100 = vrot.lane.b32.xlu1 %v2479_v40, %s2284_s19 }
  0x3a   : > { %1098 = vrot.lane.b32.xlu0 %v2476_v39, %s2284_s19 }
  0x3b   : > { %353 = vmatmul.f32.gmra.mxu0 %v2476_v39 }
  0x3c   : > { %382 = vmatmul.f32.gmra.mxu1 %v2479_v40  ;;  %1094 = vrot.lane.b32.xlu2 %v2468_v37, %s2284_s19 }
  0x3e   : > { %1090 = vrot.lane.b32.xlu1 %v2457_v34, %s2284_s19 }
  0x42   : > { %1096 = vrot.lane.b32.xlu0 %v2471_v38, %s2284_s19 }
  0x43   : > { %356 = vmatmul.f32.gmra.mxu0 %v2484_v41 }
  0x44   : > { %385 = vmatmul.f32.gmra.mxu1 %v2487_v42  ;;  %1092 = vrot.lane.b32.xlu2 %v2460_v35, %s2284_s19 }
  0x46   : > { %1063 = vrot.lane.b32.xlu1 %v2487_v42, %s2285_s20 }
  0x4a   : > { %1061 = vrot.lane.b32.xlu0 %v2484_v41, %s2285_s20 }
  0x4c   : > { %1057 = vrot.lane.b32.xlu2 %v2476_v39, %s2285_s20 }
  0x4e   : > { %1020 = vrot.lane.b32.xlu1 %v2484_v41, %s2286_s21 }
  0x52   : > { %1059 = vrot.lane.b32.xlu0 %v2479_v40, %s2285_s20 }
  0x54   : > { %1053 = vrot.lane.b32.xlu2 %v2468_v37, %s2285_s20 }
  0x56   : > { %1016 = vrot.lane.b32.xlu1 %v2476_v39, %s2286_s21 }
  0x5a   : > { %1055 = vrot.lane.b32.xlu0 %v2471_v38, %s2285_s20 }
  0x5c   : > { %1049 = vrot.lane.b32.xlu2 %v2457_v34, %s2285_s20 }
  0x5e   : > { %1012 = vrot.lane.b32.xlu1 %v2468_v37, %s2286_s21 }
  0x62   : > { %1051 = vrot.lane.b32.xlu0 %v2460_v35, %s2285_s20 }
  0x64   : > { %1008 = vrot.lane.b32.xlu2 %v2457_v34, %s2286_s21 }
  0x66   : > { %971 = vrot.lane.b32.xlu1 %v2476_v39, %s2287_s23 }
  0x6a   : > { %975 = vrot.lane.b32.xlu0 %v2484_v41, %s2287_s23 }
  0x6c   : > { %967 = vrot.lane.b32.xlu2 %v2468_v37, %s2287_s23 }
  0x6e   : > { %963 = vrot.lane.b32.xlu1 %v2457_v34, %s2287_s23 }
  0x72   : > { %1022 = vrot.lane.b32.xlu0 %v2487_v42, %s2286_s21 }
  0x74   : > { %1018 = vrot.lane.b32.xlu2 %v2479_v40, %s2286_s21 }
  0x75   : > { %v2578_v0 = vpop.permute.xlu2 %2137 }
  0x76   : > { %942 = vrot.lane.b32.xlu1 %v2484_v41, %s2288_s8 }
  0x7a   : > { %1014 = vrot.lane.b32.xlu0 %v2471_v38, %s2286_s21 }
  0x7c   : > { %1010 = vrot.lane.b32.xlu2 %v2460_v35, %s2286_s21 }
  0x7d   : > { %v2588_v2 = vpop.permute.xlu2 %1145 }
  0x7e   : > { %977 = vrot.lane.b32.xlu1 %v2487_v42, %s2287_s23 }
  0x82   : > { %938 = vrot.lane.b32.xlu0 %v2476_v39, %s2288_s8 }
  0x84   : > { %934 = vrot.lane.b32.xlu2 %v2468_v37, %s2288_s8 }
  0x86   : > { %930 = vrot.lane.b32.xlu1 %v2457_v34, %s2288_s8  ;;  %v2599_v5 = vpop.permute.xlu2 %1137 }
  0x88   : > { %v2570_v63 = vpop.permute.xlu1 %405 }
  0x8a   : > { %973 = vrot.lane.b32.xlu0 %v2479_v40, %s2287_s23 }
  0x8c   : > { %v2597_v4 = vpop.permute.xlu0 %395  ;;  %897 = vrot.lane.b32.xlu2 %v2484_v41, %s2289_s11 }
  0x8e   : > { %893 = vrot.lane.b32.xlu1 %v2476_v39, %s2289_s11  ;;  %v2611_v8 = vpop.permute.xlu2 %1104 }
  0x90   : > { %v2584_v1 = vpop.permute.xlu1 %410 }
  0x92   : > { %969 = vrot.lane.b32.xlu0 %v2471_v38, %s2287_s23 }
  0x94   : > { %v2609_v7 = vpop.permute.xlu0 %400  ;;  %965 = vrot.lane.b32.xlu2 %v2460_v35, %s2287_s23 }
  0x96   : > { %2147 = vrot.lane.b32.xlu1 %v2146_v3, %s2288_s8  ;;  %v1095_v12 = vpop.permute.xlu2 %1094 }
  0x98   : > { %v2601_v6 = vpop.permute.xlu1 %2142 }
  0x9a   : > { %889 = vrot.lane.b32.xlu0 %v2468_v37, %s2289_s11 }
  0x9c   : > { %v2623_v11 = vpop.permute.xlu0 %1141  ;;  %885 = vrot.lane.b32.xlu2 %v2457_v34, %s2289_s11 }
  0x9e   : > { %1176 = vrot.lane.b32.xlu1 %v2484_v41, %s2290_s12  ;;  %v2634_v15 = vpop.permute.xlu2 %1092 }
  0xa0   : > { %v1103_v9 = vpop.permute.xlu1 %1102 }
  0xa1   : > { %v2615_v10 = vsel %vm1106_vm1, %v1103_v9, %v2611_v8 }
  0xa2   : > { %2152 = vrot.lane.b32.xlu0 %v2151_v14, %s2288_s8 }
  0xa4   : > { %v2636_v16 = vpop.permute.xlu0 %1133  ;;  %1178 = vrot.lane.b32.xlu2 %v2487_v42, %s2290_s12 }
  0xa6   : > { %1172 = vrot.lane.b32.xlu1 %v2476_v39, %s2290_s12  ;;  %v1058_v19 = vpop.permute.xlu2 %1057 }
  0xa8   : > { %v348_v47 = vpop.f32.mrf.mxu0  ;;  %v2625_v13 = vpop.permute.xlu1 %1100 }
  0xa9   : > { %v377_v48 = vpop.f32.mrf.mxu1 }
  0xaa   : > { %v378_v58 = vadd.f32 %v377_v48, %v348_v47  ;;  %899 = vrot.lane.b32.xlu0 %v2487_v42, %s2289_s11 }
  0xac   : > { %v1099_v20 = vpop.permute.xlu0 %1098  ;;  %1174 = vrot.lane.b32.xlu2 %v2479_v40, %s2290_s12 }
  0xad   : > { %v2650_v21 = vsel %vm1106_vm1, %v1099_v20, %v2625_v13 }
  0xae   : > { %1168 = vrot.lane.b32.xlu1 %v2468_v37, %s2290_s12  ;;  %v1054_v23 = vpop.permute.xlu2 %1053 }
  0xb0   : > { %v351_v49 = vpop.f32.mrf.mxu0  ;;  %v1091_v17 = vpop.permute.xlu1 %1090 }
  0xb1   : > { %v380_v50 = vpop.f32.mrf.mxu1  ;;  %v2640_v18 = vsel %vm1106_vm1, %v1091_v17, %v2634_v15 }
  0xb2   : > { %v381_v57 = vadd.f32 %v380_v50, %v351_v49  ;;  %895 = vrot.lane.b32.xlu0 %v2479_v40, %s2289_s11  ;;  %v543_v50 = vld [vmem:[%s3701_s2 + $0x60] sm:$0xff]  ;;  %v2145_v40 = vunpack.i.h.bf16 %v2601_v6 }
  0xb3   : > { %571 = vmatpush.msra.mxu3 %v543_v50 }
  0xb4   : > { %v2658_v24 = vpop.permute.xlu0 %1096  ;;  %1170 = vrot.lane.b32.xlu2 %v2471_v38, %s2290_s12 }
  0xb5   : > { %v2662_v25 = vsel %vm1106_vm1, %v1095_v12, %v2658_v24 }
  0xb6   : > { %1164 = vrot.lane.b32.xlu1 %v2457_v34, %s2290_s12  ;;  %v2670_v28 = vpop.permute.xlu2 %1049 }
  0xb8   : > { %v354_v51 = vpop.f32.mrf.mxu0  ;;  %v2652_v22 = vpop.permute.xlu1 %1063 }
  0xb9   : > { %v383_v52 = vpop.f32.mrf.mxu1  ;;  %3723 = vst [vmem:[#allocation6_spill] sm:$0xff] %v2652_v22 }
  0xba   : > { %v384_v56 = vadd.f32 %v383_v52, %v354_v51  ;;  %891 = vrot.lane.b32.xlu0 %v2471_v38, %s2289_s11  ;;  %v544_v51 = vld [vmem:[%s3701_s2 + $0x68] sm:$0xff]  ;;  %v546_v52 = vld [vmem:[%s3701_s2 + $0x78] sm:$0xff] }
  0xbb   : > { %658 = vmatpush.msrb.mxu0 %v546_v52 }
  0xbc   : > { %v1062_v27 = vpop.permute.xlu0 %1061  ;;  %1166 = vrot.lane.b32.xlu2 %v2460_v35, %s2290_s12 }
  0xbd   : > { %v2674_v29 = vsel %vm1065_vm2, %v1062_v27, %v2652_v22 }
  0xbe   : > { %v2684_v33 = vpop.permute.xlu2 %1008 }
  0xc0   : > { %v357_v53 = vpop.f32.mrf.mxu0  ;;  %v2664_v26 = vpop.permute.xlu1 %1020 }
  0xc1   : > { %v386_v54 = vpop.f32.mrf.mxu1 }
  0xc2   : > { %v387_v55 = vadd.f32 %v386_v54, %v357_v53  ;;  %887 = vrot.lane.b32.xlu0 %v2460_v35, %s2289_s11  ;;  %v539_v54 = vld [vmem:[%s3701_s2 + $0x40] sm:$0xff]  ;;  %s3643_s11 = scalar_lea.vmem %s3706_s7, %s2079_s13 }
  0xc3   : > { %572 = vmatpush.msra.mxu3 %v539_v54 }
  0xc4   : > { %438 = vmatpush.msra.mxu2 %v387_v55  ;;  %v2682_v32 = vpop.permute.xlu0 %1059  ;;  %v540_v55 = vld [vmem:[%s3701_s2 + $0x48] sm:$0xff] }
  0xc5   : > { %3724 = vst [vmem:[#allocation7_spill] sm:$0xff] %v2682_v32  ;;  %v2690_v43 = vsel %vm1065_vm2, %v1058_v19, %v2682_v32 }
  0xc6   : > { %439 = vmatpush.msra.mxu2 %v384_v56  ;;  %v2692_v45 = vpop.permute.xlu2 %967  ;;  %v542_v56 = vld [vmem:[%s3701_s2 + $0x58] sm:$0xff] }
  0xc7   : > { %659 = vmatpush.msrb.mxu0 %v542_v56 }
  0xc8   : > { %440 = vmatpush.msra.mxu2 %v381_v57  ;;  %v2676_v30 = vpop.permute.xlu1 %1016  ;;  %v535_v57 = vld [vmem:[%s3701_s2 + $0x20] sm:$0xff] }
  0xc9   : > { %573 = vmatpush.msra.mxu3 %v535_v57 }
  0xca   : > { %441 = vmatpush.msra.mxu2 %v378_v58  ;;  %v536_v58 = vld [vmem:[%s3701_s2 + $0x28] sm:$0xff] }
  0xcb   : > { %1965 = vmatmul.msk.f32.vlgmr.msra.gmra.mxu2 %vm413_vm0, %v389_v59  ;;  %v538_v59 = vld [vmem:[%s3701_s2 + $0x38] sm:$0xff] }
  0xcc   : > { %v2694_v46 = vpop.permute.xlu0 %1055  ;;  %600 = vmatpush.msrb.mxu2 %v544_v51  ;;  %660 = vmatpush.msrb.mxu0 %v538_v59  ;;  %v545_v51 = vld [vmem:[%s3701_s2 + $0x70] sm:$0xff] }
  0xcd   : > { %3725 = vst [vmem:[#allocation8_spill] sm:$0xff] %v2694_v46  ;;  %v2700_v48 = vsel %vm1065_vm2, %v1054_v23, %v2694_v46 }
  0xce   : > { %v2702_v35 = vpop.permute.xlu2 %1018  ;;  %601 = vmatpush.msrb.mxu2 %v540_v55 }
  0xd0   : > { %v2686_v36 = vpop.permute.xlu1 %1012  ;;  %602 = vmatpush.msrb.mxu2 %v536_v58 }
  0xd3   : > { %1966 = vmatmul.msk.f32.gmra.mxu2 %vm413_vm0, %v390_v60  ;;  %v531_v60 = vld [vmem:[%s3701_s2] sm:$0xff] }
  0xd4   : > { %v2704_v49 = vpop.permute.xlu0 %1051  ;;  %574 = vmatpush.msra.mxu3 %v531_v60  ;;  %v541_v60 = vld [vmem:[%s3701_s2 + $0x50] sm:$0xff] }
  0xd6   : > { %v2744_v3 = vpop.permute.xlu2 %1010  ;;  %629 = vmatpush.msrb.mxu3 %v545_v51 }
  0xd8   : > { %v2696_v47 = vpop.permute.xlu1 %971  ;;  %630 = vmatpush.msrb.mxu3 %v541_v60 }
  0xdb   : > { %1967 = vmatmul.msk.f32.gmra.mxu2 %vm413_vm0, %v391_v61  ;;  %v534_v61 = vld [vmem:[%s3701_s2 + $0x18] sm:$0xff] }
  0xdc   : > { %661 = vmatpush.msrb.mxu0 %v534_v61  ;;  %v2746_v9 = vpop.permute.xlu0 %975 }
  0xde   : > { %v2751_v20 = vpop.permute.xlu2 %934 }
  0xe0   : > { %v2715_v53 = vpop.permute.xlu1 %963 }
  0xe3   : > { %1968 = vmatmul.msk.f32.gmra.mxu2 %vm413_vm0, %v392_v62  ;;  %v532_v62 = vld [vmem:[%s3701_s2 + $0x8] sm:$0xff] }
  0xe4   : > { %603 = vmatpush.msrb.mxu2 %v532_v62  ;;  %v2753_v23 = vpop.permute.xlu0 %1022 }
  0xe8   : > { %v2748_v14 = vpop.permute.xlu1 %942 }
  0xec   : > { %v2763_v57 = vpop.permute.xlu0 %1014 }
  0xf0   : > { %v2755_v50 = vpop.permute.xlu1 %977 }
  0xf8   : > { %v2765_v59 = vpop.permute.xlu1 %930 }
 0x14e   : > { %v443_v12 = vpop.f32.mrf.mxu2 }
 0x14f   : > { %v444_v17 = vadd.f32 %v443_v12, %v2597_v4  ;;  %v2761_v4 = vpop.permute.xlu2 %897 }
 0x151   : > { %v1969_v19 = vmul.f32 -1.442695, %v444_v17 }
 0x153   : > { %2172 = vpow2.f32 %v1969_v19  ;;  %v2140_v19 = vunpack.i.h.bf16 %v2578_v0 }
 0x155   : > { %v1150_v38 = vsel %vm1147_vm4, %v2140_v19, %v2623_v11 }
 0x156   : > { %v446_v27 = vpop.f32.mrf.mxu2 }
 0x157   : > { %v447_v52 = vadd.f32 %v446_v27, %v2609_v7  ;;  %v2139_v27 = vunpack.i.l.bf16 %v2578_v0  ;;  %v537_v0 = vld [vmem:[%s3701_s2 + $0x30] sm:$0xff] }
 0x158   : > { %631 = vmatpush.msrb.mxu3 %v537_v0  ;;  %v1040_v0 = vsel %vm3718_vm8, 0.0, %v2664_v26 }
 0x159   : > { %v2173_v54 = vpop.eup %2172  ;;  %v1970_v55 = vmul.f32 -1.442695, %v447_v52  ;;  %v2776_v52 = vpop.permute.xlu2 %965  ;;  %v1151_v44 = vsel %vm1147_vm4, %v2139_v27, %v2588_v2 }
 0x15a   : > { %v467_v56 = vadd.f32 1.0, %v2173_v54  ;;  %v2144_v54 = vunpack.i.l.bf16 %v2601_v6  ;;  %1274 = vmatpush.msra.mxu2 %v1151_v44 }
 0x15b   : > { %2174 = vpow2.f32 %v1970_v55 }
 0x15c   : > { %2176 = vrcp.f32 %v467_v56  ;;  %v480_v60 = vand.u32 2147483647, %v467_v56  ;;  %vm476_vm5 = vweird.f32 %v467_v56  ;;  %v1149_v22 = vsel %vm1147_vm4, %v2144_v54, %v2599_v5  ;;  %1275 = vmatpush.msra.mxu2 %v1150_v38 }
 0x15e   : > { %v449_v58 = vpop.f32.mrf.mxu2  ;;  %vm481_vm7 = vcmp.eq.f32.partialorder %v480_v60, 8.507059e+37  ;;  %1276 = vmatpush.msra.mxu2 %v1149_v22 }
 0x15f   : > { %v450_v61 = vadd.f32 %v449_v58, %v2570_v63  ;;  %v2779_v63 = vpop.permute.xlu0 %938 }
 0x161   : > { %v2175_v7 = vpop.eup %2174  ;;  %v1971_v62 = vmul.f32 -1.442695, %v450_v61  ;;  %v482_v61 = vand.u32 2147483648, %v467_v56  ;;  %v2804_v6 = vpop.permute.xlu2 %885 }
 0x162   : > { %v2177_v12 = vpop.eup %2176  ;;  %v2771_v17 = vadd.f32 1.0, %v2175_v7  ;;  %v2781_v7 = vpop.permute.xlu1 %893 }
 0x163   : > { %2178 = vpow2.f32 %v1971_v62  ;;  %v472_v51 = vmul.f32 %v2177_v12, %v467_v56  ;;  %vm477_vm3 = vweird.f32 %v2177_v12  ;;  %v533_v62 = vld [vmem:[%s3701_s2 + $0x10] sm:$0xff]  ;;  %v483_v27 = vor.u32 1.1754944e-38, %v482_v61 }
 0x164   : > { %2180 = vrcp.f32 %v2771_v17  ;;  %632 = vmatpush.msrb.mxu3 %v533_v62  ;;  %vm478_vm6 = vmor %vm476_vm5, %vm477_vm3  ;;  %v497_v56 = vand.u32 2147483648, %v2771_v17  ;;  %v495_v54 = vand.u32 2147483647, %v2771_v17  ;;  %vm491_vm10 = vweird.f32 %v2771_v17 }
 0x165   : > { %v473_v55 = vsub.f32 1.0, %v472_v51 }
 0x166   : > { %v452_v58 = vpop.f32.mrf.mxu2  ;;  %vm496_vm13 = vcmp.eq.f32.partialorder %v495_v54, 8.507059e+37  ;;  %v1038_v54 = vsel %vm3718_vm8, 0.0, %v2686_v36 }
 0x167   : > { %v453_v31 = vadd.f32 %v452_v58, %v2584_v1  ;;  %v474_v51 = vmul.f32 %v2177_v12, %v473_v55  ;;  %v846_v58 = vlaneseq }
 0x169   : > { %v2179_v42 = vpop.eup %2178  ;;  %v1972_v46 = vmul.f32 -1.442695, %v453_v31  ;;  %v475_v32 = vadd.f32 %v2177_v12, %v474_v51 }
 0x16a   : > { %v2181_v1 = vpop.eup %2180  ;;  %v2797_v55 = vadd.f32 1.0, %v2179_v42  ;;  %v2810_v42 = vpop.permute.xlu0 %973 }
 0x16b   : > { %2182 = vpow2.f32 %v1972_v46  ;;  %v479_v19 = vsel %vm478_vm6, %v2177_v12, %v475_v32  ;;  %v487_v44 = vmul.f32 %v2181_v1, %v2771_v17  ;;  %v1148_v32 = vsel %vm1147_vm4, %v2145_v40, %v2636_v16  ;;  %v2817_v22 = vpop.permute.xlu1 %2147 }
 0x16c   : > { %2184 = vrcp.f32 %v2797_v55  ;;  %v2802_v31 = vsel %vm481_vm7, %v483_v27, %v479_v19  ;;  %v847_v46 = vand.u32 127, %v846_v58  ;;  %1277 = vmatpush.msra.mxu2 %v1148_v32  ;;  %vm492_vm9 = vweird.f32 %v2181_v1 }
 0x16d   : > { %1973 = vmatmul.msk.f32.vlgmr.msra.gmra.mxu3 %vm413_vm0, %v2802_v31  ;;  %1977 = vmatmul.msk.f32.vlgmr.msrb.gmra.mxu2 %vm413_vm0, %v2802_v31  ;;  %v488_v38 = vsub.f32 1.0, %v487_v44  ;;  %vm493_vm11 = vmor %vm491_vm10, %vm492_vm9  ;;  %v498_v58 = vor.u32 1.1754944e-38, %v497_v56  ;;  %v1039_v17 = vsel %vm3718_vm8, 0.0, %v2676_v30  ;;  %v2843_v56 = vpop.permute.xlu2 %1178  ;;  %vm506_vm7 = vweird.f32 %v2797_v55 }
 0x16e   : > { %1985 = vmatmul.msk.f32.vlgmr.msrb.gmra.mxu0 %vm413_vm0, %v2802_v31  ;;  %v2820_v60 = vadd.s32 128, %v847_v46  ;;  %v853_v61 = vand.u32 15, %v847_v46  ;;  %v1119_v44 = vsel %vm1106_vm1, %v2634_v15, 0.0  ;;  %v1211_v15 = vld [vmem:[%s3703_s4 + $0x30] sm:$0xff] }
 0x16f   : > { %v489_v12 = vmul.f32 %v2181_v1, %v488_v38 }
 0x170   : > { %v860_v19 = vand.u32 15, %v2820_v60  ;;  %vm2828_vm12 = vcmp.ge.s32.totalorder %v853_v61, 1  ;;  %vm2877_vm6 = vcmp.le.s32.totalorder %v853_v61, 14  ;;  %v995_v61 = vsel %vm979_vm15, 0.0, %v2746_v9 }
 0x171   : > { %v2183_v40 = vpop.eup %2182  ;;  %v490_v62 = vadd.f32 %v2181_v1, %v489_v12  ;;  %1989 = vmatpush.msk.msrb.mxu1 %vm2828_vm12, %v1040_v0  ;;  %2009 = vmatpush.msk.msra.mxu2 %vm2828_vm12, %v2615_v10  ;;  %v2983_v60 = vsel %vm979_vm15, %v2696_v47, %v2810_v42 }
 0x172   : > { %v2185_v51 = vpop.eup %2184  ;;  %v2825_v27 = vadd.f32 1.0, %v2183_v40  ;;  %v2854_v12 = vpop.permute.xlu0 %969  ;;  %vm2864_vm5 = vcmp.ge.s32.totalorder %v860_v19, 1 }
 0x173   : > { %v494_v38 = vsel %vm493_vm11, %v2181_v1, %v490_v62  ;;  %v502_v32 = vmul.f32 %v2185_v51, %v2797_v55  ;;  %v2848_v1 = vsel %vm3718_vm8, %v2664_v26, %v2753_v23  ;;  %vm507_vm3 = vweird.f32 %v2185_v51  ;;  %1990 = vmatpush.msk.msrb.mxu1 %vm2828_vm12, %v1039_v17  ;;  %v1177_v40 = vpop.permute.xlu1 %1176  ;;  %2010 = vmatpush.msk.msra.mxu2 %vm2828_vm12, %v2650_v21 }
 0x174   : > { %2186 = vrcp.f32 %v2825_v27  ;;  %v2841_v46 = vsel %vm496_vm13, %v498_v58, %v494_v38  ;;  %v510_v26 = vand.u32 2147483647, %v2797_v55  ;;  %v512_v23 = vand.u32 2147483648, %v2797_v55  ;;  %2025 = vmatpush.msk.msra.mxu0 %vm2864_vm5, %v2848_v1  ;;  %vm508_vm9 = vmor %vm506_vm7, %vm507_vm3 }
 0x175   : > { %1974 = vmatmul.msk.f32.gmra.mxu3 %vm413_vm0, %v2841_v46  ;;  %1978 = vmatmul.msk.f32.gmra.mxu2 %vm413_vm0, %v2841_v46  ;;  %v503_v10 = vsub.f32 1.0, %v502_v32  ;;  %v1184_v58 = vsel %vm1180_vm14, %v1177_v40, %v2843_v56  ;;  %v1037_v38 = vsel %vm3718_vm8, 0.0, %v2684_v33  ;;  %v2887_v17 = vsel %vm3718_vm8, %v2676_v30, %v2702_v35  ;;  %v3099_v32 = vld [vmem:[%s3703_s4 + $0x20] sm:$0xff] }
 0x176   : > { %1986 = vmatmul.msk.f32.gmra.mxu0 %vm413_vm0, %v2841_v46  ;;  %1991 = vmatpush.msk.msrb.mxu1 %vm2828_vm12, %v1038_v54  ;;  %v2905_v35 = vsel %vm3718_vm8, %v2686_v36, %v2763_v57  ;;  %v513_v55 = vor.u32 1.1754944e-38, %v512_v23  ;;  %vm511_vm10 = vcmp.eq.f32.partialorder %v510_v26, 8.507059e+37  ;;  %v994_v57 = vsel %vm979_vm15, 0.0, %v2696_v47 }
 0x177   : > { %v504_v62 = vmul.f32 %v2185_v51, %v503_v10  ;;  %2017 = vmatpush.msk.msra.mxu3 %vm2877_vm6, %v1184_v58  ;;  %2011 = vmatpush.msk.msra.mxu2 %vm2828_vm12, %v2662_v25  ;;  %v2934_v26 = vsel %vm3718_vm8, %v2684_v33, %v2744_v3  ;;  %v527_v23 = vand.u32 2147483648, %v2825_v27  ;;  %v993_v40 = vsel %vm979_vm15, 0.0, %v2692_v45  ;;  %v1210_v3 = vld [vmem:[%s3703_s4 + $0x28] sm:$0xff] }
 0x178   : > { %2026 = vmatpush.msk.msra.mxu0 %vm2864_vm5, %v2887_v17  ;;  %1992 = vmatpush.msk.msrb.mxu1 %vm2828_vm12, %v1037_v38  ;;  %v525_v38 = vand.u32 2147483647, %v2825_v27  ;;  %vm2959_vm13 = vcmp.le.s32.totalorder %v860_v19, 14  ;;  %vm946_vm3 = vcmask 130048   ;;  %vm521_vm7 = vweird.f32 %v2825_v27 }
 0x179   : > { %v505_v21 = vadd.f32 %v2185_v51, %v504_v62  ;;  %2012 = vmatpush.msk.msra.mxu2 %vm2828_vm12, %v2640_v18  ;;  %vm2991_vm8 = vmneg %vm946_vm3  ;;  %v2149_v19 = vunpack.i.l.bf16 %v2817_v22 }
 0x17a   : > { %v2187_v30 = vpop.eup %2186  ;;  %2027 = vmatpush.msk.msra.mxu0 %vm2864_vm5, %v2905_v35  ;;  %1993 = vmatpush.msk.msrb.mxu1 %vm2877_vm6, %v995_v61  ;;  %v2929_v54 = vpop.permute.xlu0 %889  ;;  %v3014_v61 = vsel %vm979_vm15, %v2692_v45, %v2854_v12 }
 0x17b   : > { %v509_v25 = vsel %vm508_vm9, %v2185_v51, %v505_v21  ;;  %v517_v10 = vmul.f32 %v2187_v30, %v2825_v27  ;;  %v2923_v51 = vpop.permute.xlu2 %1174  ;;  %2013 = vmatpush.msk.msra.mxu2 %vm2877_vm6, %v2674_v29  ;;  %v1173_v62 = vpop.permute.xlu1 %1172  ;;  %vm522_vm11 = vweird.f32 %v2187_v30  ;;  %v2955_v29 = vsel %vm979_vm15, %v2746_v9, %v2755_v50  ;;  %v1216_v27 = vld [vmem:[%s3703_s4 + $0x58] sm:$0xff] }
 0x17c   : > { %v2917_v36 = vsel %vm511_vm10, %v513_v55, %v509_v25  ;;  %1994 = vmatpush.msk.msrb.mxu1 %vm2877_vm6, %v994_v57  ;;  %v1183_v33 = vsel %vm1180_vm14, %v1173_v62, %v2923_v51  ;;  %2028 = vmatpush.msk.msra.mxu0 %vm2864_vm5, %v2934_v26  ;;  %v992_v21 = vsel %vm979_vm15, 0.0, %v2715_v53  ;;  %v1066_v9 = vsel %vm1065_vm2, %v2670_v28, %v2704_v49  ;;  %vm523_vm9 = vmor %vm521_vm7, %vm522_vm11 }
 0x17d   : > { %1975 = vmatmul.msk.f32.gmra.mxu3 %vm413_vm0, %v2917_v36  ;;  %1979 = vmatmul.msk.f32.gmra.mxu2 %vm413_vm0, %v2917_v36  ;;  %v518_v18 = vsub.f32 1.0, %v517_v10  ;;  %vm526_vm10 = vcmp.eq.f32.partialorder %v525_v38, 8.507059e+37  ;;  %v3028_v25 = vsel %vm979_vm15, %v2715_v53, %v2776_v52  ;;  %vm901_vm11 = vcmask 138240  }
 0x17e   : > { %1987 = vmatmul.msk.f32.gmra.mxu0 %vm413_vm0, %v2917_v36  ;;  %2014 = vmatpush.msk.msra.mxu2 %vm2877_vm6, %v2690_v43  ;;  %v528_v43 = vor.u32 1.1754944e-38, %v527_v23  ;;  %v3045_v45 = vsel %vm946_vm3, %v2748_v14, %v2149_v19  ;;  %v917_v53 = vsel %vm901_vm11, 0.0, %v2761_v4  ;;  %v3738_v23 = vld [vmem:[#allocation8_spill] sm:$0xff]  ;;  %v1196_v38 = vsel %vm1180_vm14, %v2843_v56, 0.0 }
 0x17f   : > { %v519_v58 = vmul.f32 %v2187_v30, %v518_v18  ;;  %2018 = vmatpush.msk.msra.mxu3 %vm2877_vm6, %v1183_v33  ;;  %1995 = vmatpush.msk.msrb.mxu1 %vm2877_vm6, %v993_v40  ;;  %v3737_v18 = vld [vmem:[#allocation7_spill] sm:$0xff]  ;;  %v1079_v40 = vsel %vm1065_vm2, %v3738_v23, 0.0  ;;  %v1195_v33 = vsel %vm1180_vm14, %v2923_v51, 0.0  ;;  %v3741_v51 = vld [vmem:[#allocation2_spill] sm:$0xff] }
 0x180   : > { %2029 = vmatpush.msk.msra.mxu0 %vm2959_vm13, %v2955_v29  ;;  %2015 = vmatpush.msk.msra.mxu2 %vm2877_vm6, %v2700_v48 }
 0x181   : > { %v520_v50 = vadd.f32 %v2187_v30, %v519_v58  ;;  %1996 = vmatpush.msk.msrb.mxu1 %vm2877_vm6, %v992_v21  ;;  %v1078_v58 = vsel %vm1065_vm2, %v2704_v49, 0.0  ;;  %v1214_v49 = vld [vmem:[%s3703_s4 + $0x48] sm:$0xff] }
 0x182   : > { %2030 = vmatpush.msk.msra.mxu0 %vm2959_vm13, %v2983_v60  ;;  %2016 = vmatpush.msk.msra.mxu2 %vm2877_vm6, %v1066_v9  ;;  %v2153_v42 = vpop.permute.xlu0 %2152  ;;  %v3740_v21 = vld [vmem:[#allocation3_spill] sm:$0xff] }
 0x183   : > { %v524_v28 = vsel %vm523_vm9, %v2187_v30, %v520_v50  ;;  %v3002_v48 = vpop.permute.xlu2 %1170  ;;  %1998 = vmatpush.msk.msrb.mxu1 %vm2991_vm8, %v2748_v14  ;;  %v1169_v30 = vpop.permute.xlu1 %1168  ;;  %v916_v14 = vsel %vm901_vm11, 0.0, %v2781_v7  ;;  %v2155_v57 = vunpack.i.h.bf16 %v2153_v42  ;;  %v2254_v9 = vld [vmem:[%s2446_s28 + $0x8] sm:$0xff]  ;;  %v2255_v50 = vld [vmem:[%s2446_s28 + $0x18] sm:$0xff] }
 0x184   : > { %v2998_v47 = vsel %vm526_vm10, %v528_v43, %v524_v28  ;;  %1286 = vmatpush.msra.mxu2 %v2484_v41  ;;  %v1182_v55 = vsel %vm1180_vm14, %v1169_v30, %v3002_v48  ;;  %2031 = vmatpush.msk.msra.mxu0 %vm2959_vm13, %v3014_v61  ;;  %v2150_v41 = vunpack.i.h.bf16 %v2817_v22  ;;  %v1194_v56 = vsel %vm1180_vm14, %v3002_v48, 0.0  ;;  %v1213_v28 = vld [vmem:[%s3703_s4 + $0x40] sm:$0xff] }
 0x185   : > { %1976 = vmatmul.msk.f32.gmra.mxu3 %vm413_vm0, %v2998_v47  ;;  %1980 = vmatmul.msk.f32.gmra.mxu2 %vm413_vm0, %v2998_v47  ;;  %v2291_v43 = vmov 3   ;;  %vm3744_vm10 = vcmask 7168  }
 0x186   : > { %1988 = vmatmul.msk.f32.gmra.mxu0 %vm413_vm0, %v2998_v47  ;;  %2000 = vmatpush.msk.msrb.mxu1 %vm2991_vm8, %v2779_v63  ;;  %v949_v10 = vsel %vm946_vm3, %v2779_v63, %v2150_v41  ;;  %v914_v63 = vsel %vm901_vm11, 0.0, %v2804_v6 }
 0x187   : > { %2019 = vmatpush.msk.msra.mxu3 %vm2877_vm6, %v1182_v55  ;;  %1287 = vmatpush.msra.mxu2 %v2476_v39  ;;  %v3051_v39 = vld [vmem:[%s3703_s4 + $0x8] sm:$0xff] }
 0x188   : > { %2032 = vmatpush.msk.msra.mxu0 %vm2959_vm13, %v3028_v25  ;;  %2002 = vmatpush.msk.msrb.mxu1 %vm2991_vm8, %v2751_v20 }
 0x189   : > { %1288 = vmatpush.msra.mxu2 %v2468_v37  ;;  %v2154_v37 = vunpack.i.l.bf16 %v2153_v42  ;;  %2156 = vset.pattern.permute.xlu2 %v2291_v43 }
 0x18a   : > { %1340 = vmatpush.msra.mxu0 %v3045_v45  ;;  %2004 = vmatpush.msk.msrb.mxu1 %vm2991_vm8, %v2765_v59  ;;  %v900_v22 = vpop.permute.xlu0 %899 }
 0x18b   : > { %v3059_v52 = vpop.permute.xlu2 %1166  ;;  %1289 = vmatpush.msra.mxu2 %v2457_v34  ;;  %v1165_v12 = vpop.permute.xlu1 %1164  ;;  %v915_v34 = vsel %vm901_vm11, 0.0, %v2929_v54  ;;  %2158 = vset.pattern.permute.xlu1 %v2291_v43 }
 0x18c   : > { %2005 = vmatpush.msk.msrb.mxu1 %vm2828_vm12, %v917_v53  ;;  %1341 = vmatpush.msra.mxu0 %v949_v10  ;;  %v1193_v0 = vsel %vm1180_vm14, %v3059_v52, 0.0 }
 0x18d   : > { %1981 = vmatmul.msk.f32.vlgmr.msrb.gmra.mxu3 %vm413_vm0, %v2802_v31  ;;  %1290 = vmatmul.f32.vlgmr.msra.gmra.mxu2 %v3051_v39  ;;  %v1181_v31 = vsel %vm1180_vm14, %v1165_v12, %v3059_v52  ;;  %v2257_v12 = vld [vmem:[%s2446_s28 + $0x10] sm:$0xff] }
 0x18e   : > { %2081 = vmatpush.msk.msrb.mxu2 %vm2864_vm5, %v2848_v1  ;;  %2006 = vmatpush.msk.msrb.mxu1 %vm2828_vm12, %v916_v14  ;;  %v948_v1 = vsel %vm946_vm3, %v2751_v20, %v2154_v37  ;;  %v1205_v20 = vld [vmem:[%s3703_s4] sm:$0xff] }
 0x18f   : > { %2020 = vmatpush.msk.msra.mxu3 %vm2877_vm6, %v1181_v31  ;;  %1342 = vmatpush.msra.mxu0 %v948_v1 }
 0x190   : > { %2082 = vmatpush.msk.msrb.mxu2 %vm2864_vm5, %v2887_v17  ;;  %2007 = vmatpush.msk.msrb.mxu1 %vm2828_vm12, %v915_v34  ;;  %v947_v17 = vsel %vm946_vm3, %v2765_v59, %v2155_v57  ;;  %v905_v59 = vsel %vm901_vm11, %v2761_v4, %v900_v22  ;;  %v3146_v4 = vld [vmem:[%s3703_s4 + $0x38] sm:$0xff] }
 0x191   : > { %2097 = vmatpush.msk.msrb.mxu3 %vm1147_vm4, %v2588_v2  ;;  %1343 = vmatpush.msra.mxu0 %v947_v17 }
 0x192   : > { %2083 = vmatpush.msk.msrb.mxu2 %vm2864_vm5, %v2905_v35  ;;  %2008 = vmatpush.msk.msrb.mxu1 %vm2828_vm12, %v914_v63  ;;  %v896_v35 = vpop.permute.xlu0 %895 }
 0x193   : > { %2098 = vmatpush.msk.msrb.mxu3 %vm1147_vm4, %v2623_v11  ;;  %1261 = vmatmul.f32.vlgmr.msrb.gmra.mxu1 %v1205_v20 }
 0x194   : > { %2084 = vmatpush.msk.msrb.mxu2 %vm2864_vm5, %v2934_v26  ;;  %2037 = vmatpush.msk.msra.mxu1 %vm1147_vm4, %v2588_v2  ;;  %v904_v2 = vsel %vm901_vm11, %v2781_v7, %v896_v35 }
 0x195   : > { %1982 = vmatmul.msk.f32.gmra.mxu3 %vm413_vm0, %v2841_v46  ;;  %1293 = vmatmul.f32.gmra.mxu2 %v3099_v32 }
 0x196   : > { %2085 = vmatpush.msk.msrb.mxu2 %vm2959_vm13, %v2955_v29  ;;  %2038 = vmatpush.msk.msra.mxu1 %vm1147_vm4, %v2623_v11  ;;  %v1122_v11 = vsel %vm1106_vm1, %v2611_v8, 0.0  ;;  %v1121_v8 = vsel %vm1106_vm1, %v2625_v13, 0.0  ;;  %v3739_v29 = vld [vmem:[#allocation4_spill] sm:$0xff] }
 0x197   : > { %2099 = vmatpush.msk.msrb.mxu3 %vm1147_vm4, %v2599_v5  ;;  %2033 = vmatpush.msk.msra.mxu0 %vm2864_vm5, %v905_v59 }
 0x198   : > { %2086 = vmatpush.msk.msrb.mxu2 %vm2959_vm13, %v2983_v60  ;;  %2039 = vmatpush.msk.msra.mxu1 %vm1147_vm4, %v2599_v5  ;;  %v1208_v5 = vld [vmem:[%s3703_s4 + $0x18] sm:$0xff] }
 0x199   : > { %2100 = vmatpush.msk.msrb.mxu3 %vm1147_vm4, %v2636_v16  ;;  %2034 = vmatpush.msk.msra.mxu0 %vm2864_vm5, %v904_v2  ;;  %v3742_v60 = vld [vmem:[#allocation5_spill] sm:$0xff] }
 0x19a   : > { %2087 = vmatpush.msk.msrb.mxu2 %vm2959_vm13, %v3014_v61  ;;  %2040 = vmatpush.msk.msra.mxu1 %vm1147_vm4, %v2636_v16  ;;  %v892_v7 = vpop.permute.xlu0 %891  ;;  %v1120_v16 = vsel %vm1106_vm1, %v2658_v24, 0.0  ;;  %v3736_v24 = vld [vmem:[#allocation6_spill] sm:$0xff] }
 0x19b   : > { %2101 = vmatpush.msk.msrb.mxu3 %vm2864_vm5, %v1122_v11  ;;  %1264 = vmatmul.f32.gmra.mxu1 %v1208_v5  ;;  %v903_v13 = vsel %vm901_vm11, %v2929_v54, %v892_v7  ;;  %v1081_v46 = vsel %vm1065_vm2, %v3736_v24, 0.0  ;;  %v1080_v54 = vsel %vm1065_vm2, %v3737_v18, 0.0  ;;  %v3317_v7 = vld [vmem:[%s3705_s6 + $0x18] sm:$0xff] }
 0x19c   : > { %2088 = vmatpush.msk.msrb.mxu2 %vm2959_vm13, %v3028_v25  ;;  %2041 = vmatpush.msk.msra.mxu1 %vm2864_vm5, %v1122_v11  ;;  %v2256_v25 = vld [vmem:[%s2446_s28] sm:$0xff]  ;;  %v2265_v18 = vld [vmem:[%s2446_s28 + $0x38] sm:$0xff] }
 0x19d   : > { %1983 = vmatmul.msk.f32.gmra.mxu3 %vm413_vm0, %v2917_v36  ;;  %1296 = vmatmul.f32.gmra.mxu2 %v3146_v4  ;;  %v3189_v36 = vld [vmem:[%s3703_s4 + $0x50] sm:$0xff] }
 0x19e   : > { %2089 = vmatpush.msrb.mxu2 %v3045_v45  ;;  %2042 = vmatpush.msk.msra.mxu1 %vm2864_vm5, %v1121_v8 }
 0x19f   : > { %2102 = vmatpush.msk.msrb.mxu3 %vm2864_vm5, %v1121_v8  ;;  %2035 = vmatpush.msk.msra.mxu0 %vm2864_vm5, %v903_v13  ;;  %v3311_v8 = vld [vmem:[%s3705_s6 + $0x10] sm:$0xff] }
 0x1a0   : > { %2090 = vmatpush.msrb.mxu2 %v949_v10  ;;  %2043 = vmatpush.msk.msra.mxu1 %vm2864_vm5, %v1120_v16 }
 0x1a1   : > { %2103 = vmatpush.msk.msrb.mxu3 %vm2864_vm5, %v1120_v16  ;;  %1218 = vperm.xlu2 %2156, %v3742_v60   ;;  %v2292_v16 = vmov 1  }
 0x1a2   : > { %2091 = vmatpush.msrb.mxu2 %v948_v1  ;;  %2044 = vmatpush.msk.msra.mxu1 %vm2864_vm5, %v1119_v44  ;;  %v888_v26 = vpop.permute.xlu0 %887 }
 0x1a3   : > { %2104 = vmatpush.msk.msrb.mxu3 %vm2864_vm5, %v1119_v44  ;;  %1267 = vmatmul.f32.gmra.mxu1 %v1211_v15  ;;  %v902_v62 = vsel %vm901_vm11, %v2804_v6, %v888_v26  ;;  %v1207_v6 = vld [vmem:[%s3703_s4 + $0x10] sm:$0xff]  ;;  %v3330_v44 = vld [vmem:[%s3705_s6 + $0x8] sm:$0xff]  ;;  %vm3745_vm11 = vmmov %vm3744_vm10 }
 0x1a4   : > { %2092 = vmatpush.msrb.mxu2 %v947_v17  ;;  %2045 = vmatpush.msk.msra.mxu1 %vm2959_vm13, %v1081_v46 }
 0x1a5   : > { %1984 = vmatmul.msk.f32.gmra.mxu3 %vm413_vm0, %v2998_v47  ;;  %1299 = vmatmul.f32.gmra.mxu2 %v3189_v36 }
 0x1a6   : > { %2093 = vmatpush.msk.msrb.mxu2 %vm2864_vm5, %v905_v59  ;;  %2046 = vmatpush.msk.msra.mxu1 %vm2959_vm13, %v1080_v54 }
 0x1a7   : > { %2036 = vmatpush.msk.msra.mxu0 %vm2864_vm5, %v902_v62  ;;  %2105 = vmatpush.msk.msrb.mxu3 %vm2959_vm13, %v1081_v46 }
 0x1a8   : > { %2094 = vmatpush.msk.msrb.mxu2 %vm2864_vm5, %v904_v2  ;;  %1348 = vmatmul.f32.vlgmr.msra.gmra.mxu0 %v1205_v20  ;;  %v2259_v20 = vld [vmem:[%s2446_s28 + $0x20] sm:$0xff] }
 0x1a9   : > { %2047 = vmatpush.msk.msra.mxu1 %vm2959_vm13, %v1079_v40  ;;  %2106 = vmatpush.msk.msrb.mxu3 %vm2959_vm13, %v1080_v54 }
 0x1aa   : > { %2095 = vmatpush.msk.msrb.mxu2 %vm2864_vm5, %v903_v13  ;;  %2157 = vset.pattern.permute.xlu0 %v2291_v43  ;;  %v3324_v13 = vld [vmem:[%s3705_s6] sm:$0xff] }
 0x1ab   : > { %2048 = vmatpush.msk.msra.mxu1 %vm2959_vm13, %v1078_v58  ;;  %2107 = vmatpush.msk.msrb.mxu3 %vm2959_vm13, %v1079_v40 }
 0x1ac   : > { %2096 = vmatpush.msk.msrb.mxu2 %vm2864_vm5, %v902_v62  ;;  %1270 = vmatmul.f32.gmra.mxu1 %v1214_v49 }
 0x1ad   : > { %2021 = vmatmul.msk.f32.vlgmr.msra.gmra.mxu3 %vm413_vm0, %v1207_v6  ;;  %1357 = vmatmul.f32.vlgmr.msrb.gmra.mxu2 %v1214_v49 }
 0x1ae   : > { %1373 = vmatpush.msra.mxu1 %v3739_v29  ;;  %2049 = vmatpush.msk.msra.mxu2 %vm2959_vm13, %v1196_v38  ;;  %v2293_v38 = vmov 256.0  }
 0x1af   : > { %2108 = vmatpush.msk.msrb.mxu3 %vm2959_vm13, %v1078_v58  ;;  %2188 = vrcp.f32 %v2293_v38 }
 0x1b0   : > { %1374 = vmatpush.msra.mxu1 %v3740_v21  ;;  %2050 = vmatpush.msk.msra.mxu2 %vm2959_vm13, %v1195_v33 }
 0x1b1   : > { %1351 = vmatmul.f32.gmra.mxu0 %v1208_v5  ;;  %2109 = vmatpush.msrb.mxu3 %v3739_v29 }
 0x1b2   : > { %1375 = vmatpush.msra.mxu1 %v3741_v51  ;;  %2051 = vmatpush.msk.msra.mxu2 %vm2959_vm13, %v1194_v56 }
 0x1b3   : > { %2110 = vmatpush.msrb.mxu3 %v3740_v21 }
 0x1b4   : > { %1376 = vmatpush.msra.mxu1 %v2254_v9  ;;  %2052 = vmatpush.msk.msra.mxu2 %vm2959_vm13, %v1193_v0 }
 0x1b5   : > { %2053 = vmatmul.msk.f32.vlgmr.msra.gmra.mxu2 %vm413_vm0, %v1207_v6  ;;  %1377 = vmatmul.f32.vlgmr.msra.gmra.mxu1 %v3051_v39  ;;  %v2189_v29 = vpop.eup %2188 }
 0x1b6   : > { %2111 = vmatpush.msrb.mxu3 %v2255_v50  ;;  %v704_v21 = vmul.f32 256.0, %v2189_v29  ;;  %vm708_vm1 = vweird.f32 %v2189_v29 }
 0x1b7   : > { %2022 = vmatmul.msk.f32.gmra.mxu3 %vm413_vm0, %v1210_v3 }
 0x1b8   : > { %2112 = vmatpush.msrb.mxu3 %v2254_v9  ;;  %v705_v0 = vsub.f32 1.0, %v704_v21 }
 0x1b9   : > { %1354 = vmatmul.f32.gmra.mxu0 %v1211_v15 }
 0x1bd   : > { %1380 = vmatmul.f32.gmra.mxu1 %v3099_v32  ;;  %2054 = vmatmul.msk.f32.gmra.mxu2 %vm413_vm0, %v1210_v3  ;;  %v2258_v32 = vld [vmem:[%s2446_s28 + $0x28] sm:$0xff] }
 0x1bf   : > { %2023 = vmatmul.msk.f32.gmra.mxu3 %vm413_vm0, %v1213_v28 }
 0x1c5   : > { %1383 = vmatmul.f32.gmra.mxu1 %v3146_v4  ;;  %2055 = vmatmul.msk.f32.gmra.mxu2 %vm413_vm0, %v1213_v28 }
 0x1c7   : > { %2024 = vmatmul.msk.f32.gmra.mxu3 %vm413_vm0, %v1216_v27 }
 0x1cd   : > { %2056 = vmatmul.msk.f32.gmra.mxu2 %vm413_vm0, %v1216_v27 }
 0x1cf   : > { %1386 = vmatmul.f32.vlgmr.msrb.gmra.mxu3 %v3189_v36  ;;  %v2264_v36 = vld [vmem:[%s2446_s28 + $0x30] sm:$0xff] }
 0x1eb   : > { %v663_v30 = vpop.f32.mrf.mxu0 }
 0x1f0   : > { %v576_v47 = vpop.f32.mrf.mxu3  ;;  %v605_v19 = vpop.f32.mrf.mxu2 }
 0x1f1   : > { %v676_v55 = vmul.f32 %v2254_v9, %v605_v19  ;;  %v675_v41 = vmul.f32 %v2256_v25, %v576_v47  ;;  %v706_v9 = vmul.f32 %v2189_v29, %v705_v0 }
 0x1f3   : > { %v3287_v53 = vmul.f32 %v676_v55, %v663_v30  ;;  %v666_v22 = vpop.f32.mrf.mxu0  ;;  %v707_v43 = vadd.f32 %v2189_v29, %v706_v9 }
 0x1f5   : > { %v3361_v3 = vsel %vm708_vm1, %v2189_v29, %v707_v43  ;;  %vm3746_vm1 = vmmov %vm3744_vm10 }
 0x1f8   : > { %v579_v48 = vpop.f32.mrf.mxu3  ;;  %v608_v45 = vpop.f32.mrf.mxu2 }
 0x1f9   : > { %v678_v14 = vmul.f32 %v2255_v50, %v608_v45  ;;  %v677_v10 = vmul.f32 %v2257_v12, %v579_v48  ;;  %v2294_v48 = vmov 2  }
 0x1fb   : > { %v3294_v34 = vmul.f32 %v678_v14, %v666_v22  ;;  %v669_v59 = vpop.f32.mrf.mxu0  ;;  %v1219_v55 = vpop.permute.xlu2 %1218 }
 0x200   : > { %v582_v42 = vpop.f32.mrf.mxu3  ;;  %v611_v63 = vpop.f32.mrf.mxu2 }
 0x201   : > { %v680_v17 = vmul.f32 %v2258_v32, %v611_v63  ;;  %v679_v35 = vmul.f32 %v2259_v20, %v582_v42 }
 0x203   : > { %v3302_v11 = vmul.f32 %v680_v17, %v669_v59  ;;  %v672_v40 = vpop.f32.mrf.mxu0 }
 0x208   : > { %v585_v61 = vpop.f32.mrf.mxu3  ;;  %v614_v24 = vpop.f32.mrf.mxu2 }
 0x209   : > { %v681_v15 = vmul.f32 %v2264_v36, %v585_v61  ;;  %v682_v54 = vmul.f32 %v2265_v18, %v614_v24 }
 0x20b   : > { %v3342_v62 = vmul.f32 %v682_v54, %v672_v40 }
 0x210   : > { %v634_v39 = vpop.f32.mrf.mxu3  ;;  %v3340_v23 = vpop.f32.mrf.mxu2 }
 0x211   : > { %v3289_v52 = vmul.f32 %v675_v41, %v634_v39  ;;  %v3346_v6 = vpop.f32.mrf.mxu1 }
 0x212   : > { %v1263_v54 = vadd.f32 %v3346_v6, %v1219_v55 }
 0x213   : > { %v691_v37 = vadd.f32 %v3287_v53, %v3289_v52 }
 0x214   : > { %v1292_v29 = vadd.f32 %v3340_v23, %v1263_v54 }
 0x215   : > { %692 = vadd.xlane.f32.xlu1 %v691_v37 }
 0x218   : > { %v637_v57 = vpop.f32.mrf.mxu3  ;;  %v3348_v49 = vpop.f32.mrf.mxu2 }
 0x219   : > { %v3296_v31 = vmul.f32 %v677_v10, %v637_v57  ;;  %v3350_v33 = vpop.f32.mrf.mxu1 }
 0x21b   : > { %v694_v1 = vadd.f32 %v3294_v34, %v3296_v31 }
 0x21d   : > { %695 = vadd.xlane.f32.xlu2 %v694_v1 }
 0x220   : > { %v640_v2 = vpop.f32.mrf.mxu3  ;;  %v3352_v56 = vpop.f32.mrf.mxu2 }
 0x221   : > { %v3304_v4 = vmul.f32 %v679_v35, %v640_v2  ;;  %v3354_v51 = vpop.f32.mrf.mxu1 }
 0x223   : > { %v697_v5 = vadd.f32 %v3302_v11, %v3304_v4 }
 0x225   : > { %698 = vadd.xlane.f32.xlu0 %v697_v5  ;;  %v1349_v25 = vpop.f32.mrf.mxu0 }
 0x226   : > { %v1350_v40 = vadd.f32 %v1349_v25, %v1219_v55 }
 0x228   : > { %v643_v46 = vpop.f32.mrf.mxu3  ;;  %v3356_v50 = vpop.f32.mrf.mxu2 }
 0x229   : > { %v3338_v26 = vmul.f32 %v681_v15, %v643_v46  ;;  %v3359_v60 = vpop.f32.mrf.mxu1 }
 0x22b   : > { %v700_v58 = vadd.f32 %v3342_v62, %v3338_v26 }
 0x22e   : > { %1226 = vperm.xlu1 %2158, %v3311_v8   ;;  %v3376_v14 = vpop.f32.mrf.mxu0 }
 0x230   : > { %v3363_v27 = vpop.f32.mrf.mxu2  ;;  %v1320_v21 = vpop.f32.mrf.mxu3 }
 0x232   : > { %v1378_v41 = vpop.f32.mrf.mxu1 }
 0x233   : > { %v1379_v38 = vadd.f32 %v1378_v41, %v1350_v40 }
 0x235   : > { %1230 = vperm.xlu2 %2156, %v3317_v7  }
 0x236   : > { %2159 = vset.pattern.permute.xlu1 %v2292_v16  ;;  %v1355_v2 = vpop.f32.mrf.mxu0 }
 0x237   : > { %799 = vperm.xlu1 %2159, %v3324_v13  }
 0x238   : > { %v1407_v39 = vpop.f32.mrf.mxu2 }
 0x239   : > { %1222 = vperm.xlu0 %2157, %v3330_v44  }
 0x23d   : > { %2160 = vset.pattern.permute.xlu2 %v2292_v16 }
 0x23e   : > { %803 = vperm.xlu2 %2160, %v3330_v44  }
 0x23f   : > { %807 = vperm.xlu1 %2159, %v3311_v8  }
 0x240   : > { %v3382_v10 = vpop.f32.mrf.mxu2 }
 0x241   : > { %2161 = vset.pattern.permute.xlu0 %v2294_v48 }
 0x247   : > { %2162 = vset.pattern.permute.xlu1 %v2294_v48 }
 0x267   : > { %701 = vadd.xlane.f32.xlu2 %v700_v58 }
 0x27f   : > { %811 = vperm.xlu2 %2160, %v3317_v7  }
 0x287   : > { %2163 = vset.pattern.permute.xlu2 %v2294_v48 }
 0x288   : > { %v693_v28 = vpop.xlane.xlu1 %692 }
 0x289   : > { %v710_v47 = vmul.f32 %v3361_v3, %v693_v28 }
 0x28b   : > { %v3367_v42 = vsub.f32 %v3289_v52, %v710_v47  ;;  %v3370_v19 = vsub.f32 %v3287_v53, %v710_v47  ;;  %v3378_v52 = vpop.f32.mrf.mxu1 }
 0x28d   : > { %v722_v61 = vmul.f32 %v3367_v42, %v3367_v42  ;;  %v723_v30 = vmul.f32 %v3370_v19, %v3370_v19 }
 0x28f   : > { %v730_v45 = vadd.f32 %v723_v30, %v722_v61 }
 0x290   : > { %v696_v37 = vpop.xlane.xlu2 %695 }
 0x291   : > { %731 = vadd.xlane.f32.xlu1 %v730_v45  ;;  %v711_v12 = vmul.f32 %v3361_v3, %v696_v37 }
 0x293   : > { %v3395_v17 = vsub.f32 %v3296_v31, %v711_v12  ;;  %v3398_v20 = vsub.f32 %v3294_v34, %v711_v12  ;;  %v1413_v31 = vpop.f32.mrf.mxu2  ;;  %v3743_v34 = vmov 0   ;;  %v3443_v12 = vpop.f32.mrf.mxu3 }
 0x295   : > { %v725_v5 = vmul.f32 %v3398_v20, %v3398_v20 }
 0x298   : > { %v699_v22 = vpop.xlane.xlu0 %698  ;;  %v3413_v18 = vpop.permute.xlu2 %1230 }
 0x299   : > { %v712_v53 = vmul.f32 %v3361_v3, %v699_v22 }
 0x29b   : > { %v3385_v57 = vsub.f32 %v3304_v4, %v712_v53  ;;  %v3388_v63 = vsub.f32 %v3302_v11, %v712_v53  ;;  %v1384_v4 = vpop.f32.mrf.mxu1  ;;  %v724_v11 = vmul.f32 %v3395_v17, %v3395_v17 }
 0x29d   : > { %v726_v1 = vmul.f32 %v3385_v57, %v3385_v57  ;;  %v727_v32 = vmul.f32 %v3388_v63, %v3388_v63  ;;  %v733_v36 = vadd.f32 %v725_v5, %v724_v11 }
 0x29f   : > { %v736_v35 = vadd.f32 %v727_v32, %v726_v1 }
 0x2a0   : > { %v3400_v59 = vpop.permute.xlu1 %1226  ;;  %v3417_v58 = vpop.permute.xlu2 %803 }
 0x2a1   : > { %737 = vadd.xlane.f32.xlu0 %v736_v35  ;;  %v1356_v24 = vadd.f32 %v1355_v2, %v3400_v59 }
 0x2a3   : > { %v1385_v46 = vadd.f32 %v1384_v4, %v1356_v24 }
 0x2a5   : > { %v3407_v15 = vadd.f32 %v1413_v31, %v1385_v46  ;;  %v3446_v46 = vpop.f32.mrf.mxu3 }
 0x2a8   : > { %734 = vadd.xlane.f32.xlu2 %v733_v36 }
 0x2a9   : > { %v800_v48 = vpop.permute.xlu1 %799 }
 0x2aa   : > { %827 = vperm.xlu1 %2162, %v3330_v44   ;;  %v3420_v44 = vadd.f32 %v1320_v21, %v1292_v29 }
 0x2ab   : > { %v1223_v55 = vpop.permute.xlu0 %1222 }
 0x2b1   : > { %v808_v61 = vpop.permute.xlu1 %807 }
 0x2b5   : > { %823 = vperm.xlu0 %2161, %v3324_v13   ;;  %v3422_v13 = vadd.f32 %v1407_v39, %v1379_v38 }
 0x2b7   : > { %v1439_v6 = vadd.f32 %v3422_v13, %v3420_v44 }
 0x2bd   : > { %2164 = vset.pattern.permute.xlu0 %v3743_v34 }
 0x2c0   : > { %831 = vperm.xlu2 %2163, %v3311_v8  }
 0x2c8   : > { %2165 = vset.pattern.permute.xlu2 %v3743_v34 }
 0x2da   : > { %v702_v0 = vpop.xlane.xlu2 %701 }
 0x2db   : > { %v713_v8 = vmul.f32 %v3361_v3, %v702_v0 }
 0x2dd   : > { %v3426_v9 = vsub.f32 %v3338_v26, %v713_v8  ;;  %v3429_v43 = vsub.f32 %v3342_v62, %v713_v8 }
 0x2df   : > { %1440 = vadd.xlane.f32.xlu0 %v1439_v6  ;;  %v728_v23 = vmul.f32 %v3426_v9, %v3426_v9  ;;  %v729_v28 = vmul.f32 %v3429_v43, %v3429_v43 }
 0x2e1   : > { %v739_v47 = vadd.f32 %v729_v28, %v728_v23 }
 0x2e2   : > { %v3440_v39 = vpop.permute.xlu2 %811 }
 0x2e3   : > { %740 = vadd.xlane.f32.xlu1 %v739_v47 }
 0x2fc   : > { %835 = vperm.xlu1 %2162, %v3317_v7  }
 0x304   : > { %v732_v26 = vpop.xlane.xlu1 %731  ;;  %2166 = vset.pattern.permute.xlu1 %v2292_v16 }
 0x305   : > { %v742_v62 = vmul.f32 %v732_v26, %v3361_v3 }
 0x307   : > { %v746_v30 = vadd.f32 1e-05, %v742_v62  ;;  %v1329_v62 = vpop.f32.mrf.mxu3 }
 0x309   : > { %2190 = vrsqrt.f32 %v746_v30  ;;  %vm756_vm4 = vweird.f32 %v746_v30 }
 0x30f   : > { %v2191_v25 = vpop.eup %2190 }
 0x310   : > { %v751_v41 = vmul.f32 %v2191_v25, %v746_v30  ;;  %vm757_vm2 = vweird.f32 %v2191_v25 }
 0x311   : > { %vm758_vm8 = vmor %vm756_vm4, %vm757_vm2 }
 0x312   : > { %v752_v45 = vmul.f32 %v2191_v25, %v751_v41  ;;  %v1266_v41 = vadd.f32 %v3350_v33, %v1223_v55  ;;  %vm3747_vm2 = vmmov %vm3746_vm1 }
 0x314   : > { %v753_v37 = vmul.f32 0.5, %v752_v45  ;;  %v738_v22 = vpop.xlane.xlu0 %737  ;;  %v1353_v45 = vadd.f32 %v3376_v14, %v1223_v55 }
 0x315   : > { %v744_v53 = vmul.f32 %v738_v22, %v3361_v3 }
 0x316   : > { %v754_v7 = vsub.f32 1.5, %v753_v37 }
 0x317   : > { %v748_v1 = vadd.f32 1e-05, %v744_v53 }
 0x318   : > { %v755_v32 = vmul.f32 %v2191_v25, %v754_v7 }
 0x319   : > { %2192 = vrsqrt.f32 %v748_v1  ;;  %vm776_vm14 = vweird.f32 %v748_v1 }
 0x31a   : > { %v759_v5 = vsel %vm758_vm8, %v2191_v25, %v755_v32 }
 0x31b   : > { %v735_v35 = vpop.xlane.xlu2 %734  ;;  %v790_v36 = vmul.f32 %v759_v5, %v3367_v42  ;;  %v791_v54 = vmul.f32 %v759_v5, %v3370_v19 }
 0x31c   : > { %v743_v2 = vmul.f32 %v735_v35, %v3361_v3  ;;  %v828_v5 = vpop.permute.xlu1 %827 }
 0x31d   : > { %v814_v21 = vmul.f32 %v800_v48, %v790_v36  ;;  %v815_v0 = vmul.f32 %v800_v48, %v791_v54 }
 0x31e   : > { %v747_v4 = vadd.f32 1e-05, %v743_v2 }
 0x31f   : > { %v2193_v11 = vpop.eup %2192 }
 0x320   : > { %v771_v24 = vmul.f32 %v2193_v11, %v748_v1  ;;  %2194 = vrsqrt.f32 %v747_v4  ;;  %vm777_vm12 = vweird.f32 %v2193_v11  ;;  %vm766_vm6 = vweird.f32 %v747_v4 }
 0x321   : > { %vm778_vm15 = vmor %vm776_vm14, %vm777_vm12 }
 0x322   : > { %v772_v31 = vmul.f32 %v2193_v11, %v771_v24 }
 0x323   : > { %v832_v37 = vpop.permute.xlu2 %831 }
 0x324   : > { %v773_v40 = vmul.f32 0.5, %v772_v31 }
 0x326   : > { %v2195_v38 = vpop.eup %2194  ;;  %v774_v29 = vsub.f32 1.5, %v773_v40 }
 0x327   : > { %v761_v8 = vmul.f32 %v2195_v38, %v747_v4  ;;  %v824_v6 = vpop.permute.xlu0 %823  ;;  %vm767_vm5 = vweird.f32 %v2195_v38  ;;  %v1359_v4 = vadd.f32 %v3363_v27, %v3413_v18 }
 0x328   : > { %v775_v23 = vmul.f32 %v2193_v11, %v774_v29  ;;  %v3450_v28 = vadd.f32 %v824_v6, %v814_v21  ;;  %v3452_v47 = vadd.f32 %v824_v6, %v815_v0  ;;  %vm768_vm13 = vmor %vm766_vm6, %vm767_vm5 }
 0x329   : > { %v762_v26 = vmul.f32 %v2195_v38, %v761_v8 }
 0x32a   : > { %v1423_v42 = vadd.f32 %v3452_v47, %v3450_v28  ;;  %v779_v19 = vsel %vm778_vm15, %v2193_v11, %v775_v23 }
 0x32b   : > { %v763_v30 = vmul.f32 0.5, %v762_v26  ;;  %v794_v25 = vmul.f32 %v779_v19, %v3385_v57  ;;  %v795_v48 = vmul.f32 %v779_v19, %v3388_v63  ;;  %v1295_v57 = vadd.f32 %v3348_v49, %v1266_v41 }
 0x32c   : > { %1424 = vadd.xlane.f32.xlu2 %v1423_v42  ;;  %v1382_v63 = vadd.f32 %v3378_v52, %v1353_v45  ;;  %v1387_v52 = vpop.f32.mrf.mxu3 }
 0x32d   : > { %v764_v22 = vsub.f32 1.5, %v763_v30  ;;  %v818_v53 = vmul.f32 %v808_v61, %v794_v25  ;;  %v819_v7 = vmul.f32 %v808_v61, %v795_v48  ;;  %v1272_v61 = vadd.f32 %v3359_v60, %v3413_v18  ;;  %v1416_v18 = vpop.f32.mrf.mxu2 }
 0x32e   : > { %v3477_v24 = vadd.f32 %v3443_v12, %v1295_v57  ;;  %v1388_v36 = vadd.f32 %v1387_v52, %v1359_v4 }
 0x32f   : > { %v765_v1 = vmul.f32 %v2195_v38, %v764_v22  ;;  %v3460_v32 = vadd.f32 %v832_v37, %v818_v53  ;;  %v3462_v35 = vadd.f32 %v832_v37, %v819_v7  ;;  %v1301_v60 = vadd.f32 %v3356_v50, %v1272_v61 }
 0x330   : > { %v3491_v12 = vadd.f32 %v1416_v18, %v1388_v36 }
 0x331   : > { %v769_v33 = vsel %vm768_vm13, %v2195_v38, %v765_v1  ;;  %v1429_v14 = vadd.f32 %v3462_v35, %v3460_v32 }
 0x332   : > { %v792_v55 = vmul.f32 %v769_v33, %v3395_v17  ;;  %v793_v2 = vmul.f32 %v769_v33, %v3398_v20  ;;  %v3480_v17 = vadd.f32 %v3382_v10, %v1382_v63  ;;  %v3493_v10 = vadd.f32 %v1329_v62, %v1301_v60 }
 0x333   : > { %1430 = vadd.xlane.f32.xlu1 %v1429_v14  ;;  %v1269_v62 = vadd.f32 %v3354_v51, %v3400_v59 }
 0x334   : > { %v816_v11 = vmul.f32 %v3417_v58, %v792_v55  ;;  %v817_v49 = vmul.f32 %v3417_v58, %v793_v2  ;;  %v1442_v58 = vadd.f32 %v3480_v17, %v3477_v24  ;;  %v1448_v54 = vadd.f32 %v3491_v12, %v3493_v10 }
 0x335   : > { %v1298_v37 = vadd.f32 %v3352_v56, %v1269_v62 }
 0x336   : > { %v3482_v20 = vadd.f32 %v828_v5, %v816_v11  ;;  %v3484_v31 = vadd.f32 %v828_v5, %v817_v49 }
 0x338   : > { %v1426_v27 = vadd.f32 %v3484_v31, %v3482_v20 }
 0x33a   : > { %1427 = vadd.xlane.f32.xlu0 %v1426_v27 }
 0x33b   : > { %1443 = vadd.xlane.f32.xlu1 %v1442_v58 }
 0x342   : > { %1449 = vadd.xlane.f32.xlu0 %v1448_v54 }
 0x352   : > { %v1441_v59 = vpop.xlane.xlu0 %1440 }
 0x353   : > { %v1451_v49 = vmul.f32 %v1441_v59, %v3361_v3 }
 0x356   : > { %v741_v40 = vpop.xlane.xlu1 %740 }
 0x357   : > { %v745_v50 = vmul.f32 %v741_v40, %v3361_v3 }
 0x359   : > { %v749_v38 = vadd.f32 1e-05, %v745_v50 }
 0x35b   : > { %2196 = vrsqrt.f32 %v749_v38  ;;  %vm786_vm7 = vweird.f32 %v749_v38 }
 0x361   : > { %v2197_v29 = vpop.eup %2196 }
 0x362   : > { %v781_v21 = vmul.f32 %v2197_v29, %v749_v38  ;;  %vm787_vm3 = vweird.f32 %v2197_v29 }
 0x363   : > { %vm788_vm9 = vmor %vm786_vm7, %vm787_vm3 }
 0x364   : > { %v782_v0 = vmul.f32 %v2197_v29, %v781_v21 }
 0x366   : > { %v783_v8 = vmul.f32 0.5, %v782_v0 }
 0x368   : > { %v784_v6 = vsub.f32 1.5, %v783_v8 }
 0x36a   : > { %v785_v23 = vmul.f32 %v2197_v29, %v784_v6 }
 0x36c   : > { %v789_v26 = vsel %vm788_vm9, %v2197_v29, %v785_v23 }
 0x36d   : > { %v796_v42 = vmul.f32 %v789_v26, %v3426_v9  ;;  %v797_v19 = vmul.f32 %v789_v26, %v3429_v43  ;;  %v3512_v9 = vadd.f32 %v3446_v46, %v1298_v37 }
 0x36e   : > { %v836_v48 = vpop.permute.xlu1 %835 }
 0x36f   : > { %v820_v30 = vmul.f32 %v3440_v39, %v796_v42  ;;  %v821_v25 = vmul.f32 %v3440_v39, %v797_v19  ;;  %v1445_v51 = vadd.f32 %v3407_v15, %v3512_v9 }
 0x371   : > { %v3504_v41 = vadd.f32 %v836_v48, %v820_v30  ;;  %v3506_v45 = vadd.f32 %v836_v48, %v821_v25 }
 0x373   : > { %v1432_v22 = vadd.f32 %v3506_v45, %v3504_v41 }
 0x375   : > { %1433 = vadd.xlane.f32.xlu2 %v1432_v22 }
 0x37d   : > { %1446 = vadd.xlane.f32.xlu2 %v1445_v51 }
 0x39f   : > { %v1425_v43 = vpop.xlane.xlu2 %1424 }
 0x3a0   : > { %v1435_v56 = vmul.f32 %v1425_v43, %v3361_v3 }
 0x3a6   : > { %v1431_v39 = vpop.xlane.xlu1 %1430 }
 0x3a7   : > { %v1437_v57 = vmul.f32 %v1431_v39, %v3361_v3 }
 0x3ad   : > { %v1428_v53 = vpop.xlane.xlu0 %1427 }
 0x3ae   : > { %v1436_v7 = vmul.f32 %v1428_v53, %v3361_v3  ;;  %v1444_v14 = vpop.xlane.xlu1 %1443 }
 0x3af   : > { %v1452_v61 = vmul.f32 %v1444_v14, %v3361_v3 }
 0x3b0   : > { %v1455_v33 = vmax.f32 %v1435_v56, %v1436_v7 }
 0x3b1   : > { %v1476_v36 = vmax.f32 %v1451_v49, %v1452_v61 }
 0x3b5   : > { %v1450_v2 = vpop.xlane.xlu0 %1449 }
 0x3b6   : > { %v1454_v52 = vmul.f32 %v1450_v2, %v3361_v3 }
 0x3e8   : > { %v1434_v1 = vpop.xlane.xlu2 %1433 }
 0x3e9   : > { %v1438_v63 = vmul.f32 %v1434_v1, %v3361_v3 }
 0x3eb   : > { %v1456_v46 = vmax.f32 %v1437_v57, %v1438_v63 }
 0x3ed   : > { %v1457_v55 = vmax.f32 %v1455_v33, %v1456_v46 }
 0x3ef   : > { %v1458_v4 = vrot.slane %v1457_v55, 4 }
 0x3f0   : > { %v1447_v11 = vpop.xlane.xlu2 %1446 }
 0x3f1   : > { %v1459_v5 = vmax.f32 %v1457_v55, %v1458_v4  ;;  %v1453_v60 = vmul.f32 %v1447_v11, %v3361_v3  ;;  %v3546_v4 = vld [vmem:[%s3704_s5] sm:$0xff] }
 0x3f3   : > { %v1460_v27 = vrot.slane %v1459_v5, 2  ;;  %v1477_v18 = vmax.f32 %v1453_v60, %v1454_v52 }
 0x3f5   : > { %v1461_v58 = vmax.f32 %v1459_v5, %v1460_v27  ;;  %v1478_v54 = vmax.f32 %v1476_v36, %v1477_v18  ;;  %v3570_v5 = vld [vmem:[%s3704_s5 + $0x18] sm:$0xff] }
 0x3f7   : > { %v1462_v40 = vrot.slane %v1461_v58, 1  ;;  %v1479_v50 = vrot.slane %v1478_v54, 4 }
 0x3f9   : > { %v1480_v38 = vmax.f32 %v1478_v54, %v1479_v50  ;;  %v1463_v29 = vmax.f32 %v1461_v58, %v1462_v40 }
 0x3fb   : > { %v1481_v21 = vrot.slane %v1480_v38, 2  ;;  %v1467_v8 = vsub.f32 %v1438_v63, %v1463_v29  ;;  %v1466_v26 = vsub.f32 %v1437_v57, %v1463_v29  ;;  %v1465_v30 = vsub.f32 %v1436_v7, %v1463_v29 }
 0x3fc   : > { %v1464_v59 = vsub.f32 %v1435_v56, %v1463_v29 }
 0x3fd   : > { %v1482_v0 = vmax.f32 %v1480_v38, %v1481_v21  ;;  %v1474_v42 = vmul.f32 1.442695, %v1467_v8  ;;  %v1472_v22 = vmul.f32 1.442695, %v1466_v26  ;;  %v1470_v43 = vmul.f32 1.442695, %v1465_v30 }
 0x3fe   : > { %v1468_v53 = vmul.f32 1.442695, %v1464_v59 }
 0x3ff   : > { %v1483_v6 = vrot.slane %v1482_v0, 1  ;;  %2198 = vpow2.f32 %v1474_v42 }
 0x401   : > { %v1484_v23 = vmax.f32 %v1482_v0, %v1483_v6 }
 0x403   : > { %v1487_v19 = vsub.f32 %v1453_v60, %v1484_v23  ;;  %v1488_v62 = vsub.f32 %v1454_v52, %v1484_v23  ;;  %v1486_v3 = vsub.f32 %v1452_v61, %v1484_v23  ;;  %v1485_v25 = vsub.f32 %v1451_v49, %v1484_v23  ;;  %v3556_v49 = vld [vmem:[%s3704_s5 + $0x8] sm:$0xff]  ;;  %v3563_v52 = vld [vmem:[%s3704_s5 + $0x10] sm:$0xff] }
 0x405   : > { %v1493_v48 = vmul.f32 1.442695, %v1487_v19  ;;  %v1495_v37 = vmul.f32 1.442695, %v1488_v62  ;;  %v1491_v51 = vmul.f32 1.442695, %v1486_v3  ;;  %v3524_v1 = vpop.eup %2198 }
 0x406   : > { %v1489_v39 = vmul.f32 1.442695, %v1485_v25 }
 0x407   : > { %2200 = vpow2.f32 %v1493_v48 }
 0x408   : > { %2202 = vpow2.f32 %v1495_v37 }
 0x409   : > { %2204 = vpow2.f32 %v1472_v22 }
 0x40a   : > { %2206 = vpow2.f32 %v1491_v51 }
 0x40b   : > { %2208 = vpow2.f32 %v1470_v43 }
 0x40c   : > { %2210 = vpow2.f32 %v1489_v39 }
 0x40d   : > { %v3526_v7 = vpop.eup %2200  ;;  %2212 = vpow2.f32 %v1468_v53 }
 0x40e   : > { %v3528_v57 = vpop.eup %2202 }
 0x40f   : > { %v3530_v63 = vpop.eup %2204  ;;  %v1500_v56 = vsel %vm3744_vm10, %v3524_v1, %v3528_v57 }
 0x410   : > { %v2207_v33 = vpop.eup %2206  ;;  %1525 = vmatpush.msra.mxu3 %v1500_v56  ;;  %v1499_v14 = vsel %vm3745_vm11, %v3530_v63, %v3526_v7 }
 0x411   : > { %v2209_v46 = vpop.eup %2208 }
 0x412   : > { %v3538_v55 = vpop.eup %2210  ;;  %1526 = vmatpush.msra.mxu3 %v1499_v14  ;;  %v1498_v2 = vsel %vm3746_vm1, %v2209_v46, %v2207_v33 }
 0x413   : > { %v3541_v61 = vpop.eup %2212 }
 0x414   : > { %1527 = vmatpush.msra.mxu3 %v1498_v2  ;;  %v1497_v11 = vsel %vm3747_vm2, %v3541_v61, %v3538_v55 }
 0x416   : > { %1528 = vmatpush.msra.mxu3 %v1497_v11 }
 0x417   : > { %2057 = vmatmul.msk.f32.vlgmr.msra.gmra.mxu3 %vm413_vm0, %v3546_v4 }
 0x41f   : > { %2058 = vmatmul.msk.f32.gmra.mxu3 %vm413_vm0, %v3556_v49 }
 0x427   : > { %2059 = vmatmul.msk.f32.gmra.mxu3 %vm413_vm0, %v3563_v52 }
 0x42f   : > { %2060 = vmatmul.msk.f32.gmra.mxu3 %vm413_vm0, %v3570_v5 }
 0x49a   : > { %v3574_v60 = vpop.f32.mrf.mxu3 }
 0x49b   : > { %vm1547_vm1 = vweird.f32 %v3574_v60 }
 0x4a2   : > { %v1533_v36 = vpop.f32.mrf.mxu3 }
 0x4a3   : > { %2214 = vrcp.f32 %v1533_v36  ;;  %v1568_v50 = vand.u32 2147483648, %v1533_v36  ;;  %v1566_v38 = vand.u32 2147483647, %v1533_v36  ;;  %vm1562_vm8 = vweird.f32 %v1533_v36 }
 0x4a5   : > { %v1569_v0 = vor.u32 1.1754944e-38, %v1568_v50  ;;  %vm1567_vm14 = vcmp.eq.f32.partialorder %v1566_v38, 8.507059e+37 }
 0x4a9   : > { %v2215_v27 = vpop.eup %2214 }
 0x4aa   : > { %v1558_v18 = vmul.f32 %v2215_v27, %v1533_v36  ;;  %v1536_v58 = vpop.f32.mrf.mxu3  ;;  %vm1563_vm4 = vweird.f32 %v2215_v27 }
 0x4ab   : > { %2216 = vrcp.f32 %v1536_v58  ;;  %vm1564_vm12 = vmor %vm1562_vm8, %vm1563_vm4  ;;  %v1583_v62 = vand.u32 2147483648, %v1536_v58  ;;  %v1581_v48 = vand.u32 2147483647, %v1536_v58  ;;  %vm1577_vm5 = vweird.f32 %v1536_v58 }
 0x4ac   : > { %v1559_v54 = vsub.f32 1.0, %v1558_v18  ;;  %2218 = vrcp.f32 %v3574_v60 }
 0x4ad   : > { %v1584_v59 = vor.u32 1.1754944e-38, %v1583_v62  ;;  %vm1582_vm13 = vcmp.eq.f32.partialorder %v1581_v48, 8.507059e+37 }
 0x4ae   : > { %v1560_v40 = vmul.f32 %v2215_v27, %v1559_v54 }
 0x4b0   : > { %v1561_v29 = vadd.f32 %v2215_v27, %v1560_v40 }
 0x4b1   : > { %v2217_v21 = vpop.eup %2216 }
 0x4b2   : > { %v1573_v8 = vmul.f32 %v2217_v21, %v1536_v58  ;;  %v1539_v6 = vpop.f32.mrf.mxu3  ;;  %v1565_v23 = vsel %vm1564_vm12, %v2215_v27, %v1561_v29  ;;  %v2219_v26 = vpop.eup %2218  ;;  %vm1578_vm15 = vweird.f32 %v2217_v21  ;;  %v1551_v29 = vand.u32 2147483647, %v3574_v60 }
 0x4b3   : > { %2220 = vrcp.f32 %v1539_v6  ;;  %v1570_v19 = vsel %vm1567_vm14, %v1569_v0, %v1565_v23  ;;  %v1543_v37 = vmul.f32 %v2219_v26, %v3574_v60  ;;  %vm1579_vm6 = vmor %vm1577_vm5, %vm1578_vm15  ;;  %v1598_v2 = vand.u32 2147483648, %v1539_v6 }
 0x4b4   : > { %v1574_v42 = vsub.f32 1.0, %v1573_v8  ;;  %v1603_v30 = vmul.f32 %v2207_v33, %v1570_v19  ;;  %v1571_v3 = vmul.f32 %v2209_v46, %v1570_v19  ;;  %v1596_v36 = vand.u32 2147483647, %v1539_v6 }
 0x4b5   : > { %v1544_v53 = vsub.f32 1.0, %v1543_v37  ;;  %vm1592_vm7 = vweird.f32 %v1539_v6  ;;  %v1599_v58 = vor.u32 1.1754944e-38, %v1598_v2  ;;  %vm1548_vm11 = vweird.f32 %v2219_v26 }
 0x4b6   : > { %v1575_v25 = vmul.f32 %v2217_v21, %v1574_v42  ;;  %1641 = vperm.xlu1 %2166, %v1603_v30   ;;  %1613 = vperm.xlu2 %2165, %v1571_v3   ;;  %vm1597_vm10 = vcmp.eq.f32.partialorder %v1596_v36, 8.507059e+37  ;;  %vm1549_vm2 = vmor %vm1547_vm1, %vm1548_vm11  ;;  %vm1552_vm4 = vcmp.eq.f32.partialorder %v1551_v29, 8.507059e+37 }
 0x4b7   : > { %v1545_v27 = vmul.f32 %v2219_v26, %v1544_v53 }
 0x4b8   : > { %v1576_v22 = vadd.f32 %v2217_v21, %v1575_v25 }
 0x4b9   : > { %v2221_v51 = vpop.eup %2220  ;;  %v1546_v50 = vadd.f32 %v2219_v26, %v1545_v27 }
 0x4ba   : > { %v1588_v43 = vmul.f32 %v2221_v51, %v1539_v6  ;;  %v1580_v39 = vsel %vm1579_vm6, %v2217_v21, %v1576_v22  ;;  %vm1593_vm3 = vweird.f32 %v2221_v51 }
 0x4bb   : > { %v1585_v56 = vsel %vm1582_vm13, %v1584_v59, %v1580_v39  ;;  %vm1594_vm9 = vmor %vm1592_vm7, %vm1593_vm3  ;;  %v1550_v21 = vsel %vm1549_vm2, %v2219_v26, %v1546_v50 }
 0x4bc   : > { %v1589_v14 = vsub.f32 1.0, %v1588_v43  ;;  %v1604_v33 = vmul.f32 %v3526_v7, %v1585_v56  ;;  %v1586_v46 = vmul.f32 %v3530_v63, %v1585_v56  ;;  %v1553_v7 = vand.u32 2147483648, %v3574_v60 }
 0x4be   : > { %v1590_v11 = vmul.f32 %v2221_v51, %v1589_v14  ;;  %1618 = vperm.xlu0 %2164, %v1586_v46   ;;  %1646 = vperm.xlu1 %2166, %v1604_v33   ;;  %v1554_v0 = vor.u32 1.1754944e-38, %v1553_v7 }
 0x4bf   : > { %2168 = vset.pattern.permute.xlu2 %v2292_v16 }
 0x4c0   : > { %v1591_v18 = vadd.f32 %v2221_v51, %v1590_v11  ;;  %v1555_v8 = vsel %vm1552_vm4, %v1554_v0, %v1550_v21 }
 0x4c1   : > { %v1556_v6 = vmul.f32 %v3541_v61, %v1555_v8 }
 0x4c2   : > { %v1595_v54 = vsel %vm1594_vm9, %v2221_v51, %v1591_v18 }
 0x4c3   : > { %v1600_v40 = vsel %vm1597_vm10, %v1599_v58, %v1595_v54 }
 0x4c4   : > { %v1605_v63 = vmul.f32 %v3528_v57, %v1600_v40  ;;  %v1601_v38 = vmul.f32 %v3524_v1, %v1600_v40  ;;  %v1602_v1 = vmul.f32 %v3538_v55, %v1555_v8 }
 0x4c6   : > { %1651 = vperm.xlu2 %2168, %v1605_v63   ;;  %2171 = vset.pattern.permute.xlu0 %v2292_v16 }
 0x4c7   : > { %2167 = vset.pattern.permute.xlu1 %v3743_v34 }
 0x4c8   : > { %1623 = vperm.xlu1 %2167, %v1601_v38  }
 0x4ce   : > { %2169 = vset.pattern.permute.xlu2 %v3743_v34 }
 0x4cf   : > { %1608 = vperm.xlu2 %2169, %v1556_v6  }
 0x4d0   : > { %2170 = vset.pattern.permute.xlu1 %v2292_v16 }
 0x4d1   : > { %1636 = vperm.xlu1 %2170, %v1602_v1  }
 0x510   : > { %v1614_v60 = vpop.permute.xlu2 %1613 }
 0x520   : > { %v1652_v42 = vpop.permute.xlu2 %1651 }
 0x521   : > { %v1660_v26 = vmul.f32 %v1652_v42, %v3504_v41  ;;  %v1661_v62 = vmul.f32 %v1652_v42, %v3506_v45  ;;  %v1628_v45 = vmul.f32 %v1614_v60, %v3477_v24 }
 0x528   : > { %v1642_v57 = vpop.permute.xlu1 %1641 }
 0x529   : > { %v1656_v48 = vmul.f32 %v1642_v57, %v3482_v20  ;;  %v1657_v37 = vmul.f32 %v1642_v57, %v3484_v31  ;;  %v1609_v59 = vpop.permute.xlu2 %1608 }
 0x52a   : > { %v1626_v31 = vmul.f32 %v1609_v59, %v3420_v44 }
 0x530   : > { %v1647_v23 = vpop.permute.xlu1 %1646  ;;  %v1619_v19 = vpop.permute.xlu0 %1618 }
 0x531   : > { %v1630_v30 = vmul.f32 %v1619_v19, %v3512_v9  ;;  %v1631_v61 = vmul.f32 %v1619_v19, %v3407_v15  ;;  %v1658_v3 = vmul.f32 %v1647_v23, %v3460_v32  ;;  %v1659_v55 = vmul.f32 %v1647_v23, %v3462_v35 }
 0x532   : > { %v1629_v9 = vmul.f32 %v1614_v60, %v3480_v17  ;;  %v1664_v32 = vadd.f32 %v1656_v48, %v1628_v45  ;;  %v2266_v45 = vld [vmem:[%s2446_s28] sm:$0xff] }
 0x533   : > { %v1666_v15 = vadd.f32 %v1658_v3, %v1630_v30  ;;  %v1667_v51 = vadd.f32 %v1659_v55, %v1631_v61 }
 0x534   : > { %v1665_v35 = vadd.f32 %v1657_v37, %v1629_v9 }
 0x53a   : > { %v1624_v34 = vpop.permute.xlu1 %1623 }
 0x53b   : > { %v1632_v16 = vmul.f32 %v1624_v34, %v3493_v10  ;;  %v1633_v25 = vmul.f32 %v1624_v34, %v3491_v12  ;;  %v1627_v12 = vmul.f32 %v1609_v59, %v3422_v13 }
 0x53d   : > { %v1668_v41 = vadd.f32 %v1660_v26, %v1632_v16  ;;  %v1669_v22 = vadd.f32 %v1661_v62, %v1633_v25 }
 0x53f   : > { %1682 = vmatpush.msrb.mxu0 %v1668_v41  ;;  %1711 = vmatpush.msrb.mxu1 %v1669_v22 }
 0x541   : > { %1683 = vmatpush.msrb.mxu0 %v1666_v15  ;;  %1712 = vmatpush.msrb.mxu1 %v1667_v51 }
 0x543   : > { %1684 = vmatpush.msrb.mxu0 %v1664_v32  ;;  %1713 = vmatpush.msrb.mxu1 %v1665_v35  ;;  %v1637_v20 = vpop.permute.xlu1 %1636  ;;  %v2267_v35 = vld [vmem:[%s2446_s28 + $0x8] sm:$0xff] }
 0x544   : > { %v1654_v24 = vmul.f32 %v1637_v20, %v3450_v28  ;;  %v1655_v17 = vmul.f32 %v1637_v20, %v3452_v47 }
 0x546   : > { %v1662_v10 = vadd.f32 %v1654_v24, %v1626_v31  ;;  %v1663_v43 = vadd.f32 %v1655_v17, %v1627_v12 }
 0x548   : > { %1685 = vmatpush.msrb.mxu0 %v1662_v10  ;;  %1714 = vmatpush.msrb.mxu1 %v1663_v43 }
 0x549   : > { %2061 = vmatmul.msk.f32.vlgmr.msrb.gmra.mxu0 %vm413_vm0, %v3546_v4  ;;  %2065 = vmatmul.msk.f32.vlgmr.msrb.gmra.mxu1 %vm413_vm0, %v3546_v4 }
 0x551   : > { %2062 = vmatmul.msk.f32.gmra.mxu0 %vm413_vm0, %v3556_v49  ;;  %2066 = vmatmul.msk.f32.gmra.mxu1 %vm413_vm0, %v3556_v49 }
 0x559   : > { %2063 = vmatmul.msk.f32.gmra.mxu0 %vm413_vm0, %v3563_v52  ;;  %2067 = vmatmul.msk.f32.gmra.mxu1 %vm413_vm0, %v3563_v52 }
 0x561   : > { %2064 = vmatmul.msk.f32.gmra.mxu0 %vm413_vm0, %v3570_v5  ;;  %2068 = vmatmul.msk.f32.gmra.mxu1 %vm413_vm0, %v3570_v5 }
 0x5c6   : > { %v1687_v44 = vpop.f32.mrf.mxu0  ;;  %v1716_v13 = vpop.f32.mrf.mxu1 }
 0x5c7   : > { %v2069_v28 = vmul.f32 -1.442695, %v1687_v44  ;;  %v2070_v47 = vmul.f32 -1.442695, %v1716_v13 }
 0x5c9   : > { %2222 = vpow2.f32 %v2069_v28 }
 0x5ca   : > { %2224 = vpow2.f32 %v2070_v47 }
 0x5ce   : > { %v1690_v4 = vpop.f32.mrf.mxu0  ;;  %v1719_v49 = vpop.f32.mrf.mxu1 }
 0x5cf   : > { %v2223_v39 = vpop.eup %2222  ;;  %v2071_v53 = vmul.f32 -1.442695, %v1690_v4  ;;  %v2072_v33 = vmul.f32 -1.442695, %v1719_v49 }
 0x5d0   : > { %v2225_v56 = vpop.eup %2224  ;;  %v1752_v14 = vadd.f32 1.0, %v2223_v39 }
 0x5d1   : > { %v1753_v52 = vadd.f32 1.0, %v2225_v56  ;;  %2226 = vpow2.f32 %v2071_v53 }
 0x5d2   : > { %2228 = vrcp.f32 %v1752_v14  ;;  %v1769_v63 = vand.u32 2147483647, %v1752_v14  ;;  %v1771_v29 = vand.u32 2147483648, %v1752_v14  ;;  %vm1765_vm8 = vweird.f32 %v1752_v14 }
 0x5d3   : > { %2230 = vrcp.f32 %v1753_v52  ;;  %v1786_v0 = vand.u32 2147483648, %v1753_v52  ;;  %v1784_v1 = vand.u32 2147483647, %v1753_v52  ;;  %vm1780_vm15 = vweird.f32 %v1753_v52 }
 0x5d4   : > { %2232 = vpow2.f32 %v2072_v33  ;;  %vm3630_vm14 = vcmp.eq.f32.partialorder %v1769_v63, 8.507059e+37  ;;  %v1772_v30 = vor.u32 1.1754944e-38, %v1771_v29 }
 0x5d5   : > { %v1787_v34 = vor.u32 1.1754944e-38, %v1786_v0  ;;  %vm1785_vm13 = vcmp.eq.f32.partialorder %v1784_v1, 8.507059e+37 }
 0x5d6   : > { %v1693_v46 = vpop.f32.mrf.mxu0  ;;  %v1722_v5 = vpop.f32.mrf.mxu1 }
 0x5d7   : > { %v2227_v2 = vpop.eup %2226  ;;  %v2073_v11 = vmul.f32 -1.442695, %v1693_v46  ;;  %v2074_v18 = vmul.f32 -1.442695, %v1722_v5 }
 0x5d8   : > { %v2229_v36 = vpop.eup %2228  ;;  %v3624_v27 = vadd.f32 1.0, %v2227_v2 }
 0x5d9   : > { %v2231_v58 = vpop.eup %2230  ;;  %v1761_v54 = vmul.f32 %v2229_v36, %v1752_v14  ;;  %2234 = vpow2.f32 %v2073_v11  ;;  %vm1766_vm0 = vweird.f32 %v2229_v36 }
 0x5da   : > { %v2233_v40 = vpop.eup %2232  ;;  %v1776_v50 = vmul.f32 %v2231_v58, %v1753_v52  ;;  %2236 = vrcp.f32 %v3624_v27  ;;  %vm1781_vm12 = vweird.f32 %v2231_v58  ;;  %vm1767_vm5 = vmor %vm1765_vm8, %vm1766_vm0  ;;  %v1801_v32 = vand.u32 2147483648, %v3624_v27  ;;  %v2268_v52 = vld [vmem:[%s2446_s28 + $0x10] sm:$0xff] }
 0x5db   : > { %v1762_v7 = vsub.f32 1.0, %v1761_v54  ;;  %v3627_v38 = vadd.f32 1.0, %v2233_v40  ;;  %2238 = vpow2.f32 %v2074_v18  ;;  %vm1782_vm6 = vmor %vm1780_vm15, %vm1781_vm12  ;;  %v1799_v20 = vand.u32 2147483647, %v3624_v27 }
 0x5dc   : > { %v1777_v21 = vsub.f32 1.0, %v1776_v50  ;;  %vm1795_vm7 = vweird.f32 %v3624_v27  ;;  %v1802_v44 = vor.u32 1.1754944e-38, %v1801_v32  ;;  %v2269_v50 = vld [vmem:[%s2446_s28 + $0x18] sm:$0xff] }
 0x5dd   : > { %v1763_v8 = vmul.f32 %v2229_v36, %v1762_v7  ;;  %2240 = vrcp.f32 %v3627_v38  ;;  %v1816_v13 = vand.u32 2147483648, %v3627_v38  ;;  %v1814_v4 = vand.u32 2147483647, %v3627_v38 }
 0x5de   : > { %v1778_v6 = vmul.f32 %v2231_v58, %v1777_v21  ;;  %v1696_v57 = vpop.f32.mrf.mxu0  ;;  %v1725_v60 = vpop.f32.mrf.mxu1  ;;  %vm1800_vm11 = vcmp.eq.f32.partialorder %v1799_v20, 8.507059e+37  ;;  %vm1810_vm1 = vweird.f32 %v3627_v38  ;;  %v2272_v20 = vld [vmem:[%s2446_s28 + $0x30] sm:$0xff] }
 0x5df   : > { %v2235_v23 = vpop.eup %2234  ;;  %v1764_v42 = vadd.f32 %v2229_v36, %v1763_v8  ;;  %v2075_v26 = vmul.f32 -1.442695, %v1696_v57  ;;  %v2076_v25 = vmul.f32 -1.442695, %v1725_v60  ;;  %v1817_v5 = vor.u32 1.1754944e-38, %v1816_v13 }
 0x5e0   : > { %v2237_v62 = vpop.eup %2236  ;;  %v1779_v61 = vadd.f32 %v2231_v58, %v1778_v6  ;;  %v3634_v3 = vadd.f32 1.0, %v2235_v23  ;;  %vm1815_vm4 = vcmp.eq.f32.partialorder %v1814_v4, 8.507059e+37 }
 0x5e1   : > { %v1768_v55 = vsel %vm1767_vm5, %v2229_v36, %v1764_v42  ;;  %v1791_v16 = vmul.f32 %v2237_v62, %v3624_v27  ;;  %2242 = vpow2.f32 %v2075_v26  ;;  %v2239_v48 = vpop.eup %2238  ;;  %vm1796_vm3 = vweird.f32 %v2237_v62  ;;  %v2270_v42 = vld [vmem:[%s2446_s28 + $0x20] sm:$0xff] }
 0x5e2   : > { %v1773_v37 = vsel %vm3630_vm14, %v1772_v30, %v1768_v55  ;;  %v1783_v41 = vsel %vm1782_vm6, %v2231_v58, %v1779_v61  ;;  %2244 = vrcp.f32 %v3634_v3  ;;  %v3654_v24 = vadd.f32 1.0, %v2239_v48  ;;  %vm1797_vm9 = vmor %vm1795_vm7, %vm1796_vm3 }
 0x5e3   : > { %v2241_v22 = vpop.eup %2240  ;;  %v1880_v9 = vmul.f32 %v2266_v45, %v1773_v37  ;;  %v1788_v15 = vsel %vm1785_vm13, %v1787_v34, %v1783_v41  ;;  %v1792_v51 = vsub.f32 1.0, %v1791_v16  ;;  %2246 = vpow2.f32 %v2076_v25  ;;  %v2271_v41 = vld [vmem:[%s2446_s28 + $0x28] sm:$0xff] }
 0x5e4   : > { %v1881_v59 = vmul.f32 %v2267_v35, %v1788_v15  ;;  %v1806_v31 = vmul.f32 %v2241_v22, %v3627_v38  ;;  %2248 = vrcp.f32 %v3654_v24  ;;  %vm1811_vm10 = vweird.f32 %v2241_v22 }
 0x5e5   : > { %1888 = vst [vmem:[%s3643_s11] sm:$0xff] %v1880_v9  ;;  %v1793_v12 = vmul.f32 %v2237_v62, %v1792_v51  ;;  %vm1812_vm2 = vmor %vm1810_vm1, %vm1811_vm10  ;;  %v1831_v36 = vand.u32 2147483648, %v3634_v3  ;;  %v1829_v40 = vand.u32 2147483647, %v3634_v3  ;;  %vm1825_vm8 = vweird.f32 %v3634_v3 }
 0x5e6   : > { %1889 = vst [vmem:[%s3643_s11 + $0x8] sm:$0xff] %v1881_v59  ;;  %v1807_v17 = vsub.f32 1.0, %v1806_v31  ;;  %v1846_v6 = vand.u32 2147483648, %v3654_v24  ;;  %v1844_v23 = vand.u32 2147483647, %v3654_v24  ;;  %vm1840_vm5 = vweird.f32 %v3654_v24 }
 0x5e7   : > { %v2243_v10 = vpop.eup %2242  ;;  %v1794_v43 = vadd.f32 %v2237_v62, %v1793_v12  ;;  %v1832_v21 = vor.u32 1.1754944e-38, %v1831_v36  ;;  %vm1830_vm14 = vcmp.eq.f32.partialorder %v1829_v40, 8.507059e+37 }
 0x5e8   : > { %v2245_v28 = vpop.eup %2244  ;;  %v1808_v47 = vmul.f32 %v2241_v22, %v1807_v17  ;;  %v3661_v49 = vadd.f32 1.0, %v2243_v10  ;;  %v1847_v34 = vor.u32 1.1754944e-38, %v1846_v6  ;;  %vm1845_vm3 = vcmp.eq.f32.partialorder %v1844_v23, 8.507059e+37 }
 0x5e9   : > { %v1798_v39 = vsel %vm1797_vm9, %v2237_v62, %v1794_v43  ;;  %v1821_v53 = vmul.f32 %v2245_v28, %v3634_v3  ;;  %v2247_v33 = vpop.eup %2246  ;;  %vm1826_vm0 = vweird.f32 %v2245_v28  ;;  %v2273_v43 = vld [vmem:[%s2446_s28 + $0x38] sm:$0xff] }
 0x5ea   : > { %v1803_v56 = vsel %vm1800_vm11, %v1802_v44, %v1798_v39  ;;  %v1809_v14 = vadd.f32 %v2241_v22, %v1808_v47  ;;  %2250 = vrcp.f32 %v3661_v49  ;;  %v3668_v27 = vadd.f32 1.0, %v2247_v33  ;;  %v2249_v18 = vpop.eup %2248  ;;  %vm1827_vm12 = vmor %vm1825_vm8, %vm1826_vm0 }
 0x5eb   : > { %v1882_v46 = vmul.f32 %v2268_v52, %v1803_v56  ;;  %v1822_v2 = vsub.f32 1.0, %v1821_v53  ;;  %v1836_v63 = vmul.f32 %v2249_v18, %v3654_v24  ;;  %vm1841_vm15 = vweird.f32 %v2249_v18 }
 0x5ec   : > { %v1813_v11 = vsel %vm1812_vm2, %v2241_v22, %v1809_v14  ;;  %2252 = vrcp.f32 %v3668_v27  ;;  %v1861_v30 = vand.u32 2147483648, %v3661_v49  ;;  %vm1842_vm6 = vmor %vm1840_vm5, %vm1841_vm15  ;;  %v1859_v55 = vand.u32 2147483647, %v3661_v49 }
 0x5ed   : > { %1890 = vst [vmem:[%s3643_s11 + $0x10] sm:$0xff] %v1882_v46  ;;  %v1818_v58 = vsel %vm1815_vm4, %v1817_v5, %v1813_v11  ;;  %v1823_v54 = vmul.f32 %v2245_v28, %v1822_v2  ;;  %v1837_v0 = vsub.f32 1.0, %v1836_v63  ;;  %vm1855_vm7 = vweird.f32 %v3661_v49 }
 0x5ee   : > { %v1883_v7 = vmul.f32 %v2269_v50, %v1818_v58  ;;  %v1862_v45 = vor.u32 1.1754944e-38, %v1861_v30  ;;  %vm1860_vm10 = vcmp.eq.f32.partialorder %v1859_v55, 8.507059e+37  ;;  %v1876_v51 = vand.u32 2147483648, %v3668_v27 }
 0x5ef   : > { %v1824_v38 = vadd.f32 %v2245_v28, %v1823_v54  ;;  %v1838_v60 = vmul.f32 %v2249_v18, %v1837_v0  ;;  %v1874_v59 = vand.u32 2147483647, %v3668_v27  ;;  %vm1870_vm1 = vweird.f32 %v3668_v27 }
 0x5f0   : > { %v2251_v29 = vpop.eup %2250  ;;  %1891 = vst [vmem:[%s3643_s11 + $0x18] sm:$0xff] %v1883_v7  ;;  %v1877_v24 = vor.u32 1.1754944e-38, %v1876_v51 }
 0x5f1   : > { %v1828_v8 = vsel %vm1827_vm12, %v2245_v28, %v1824_v38  ;;  %v1851_v1 = vmul.f32 %v2251_v29, %v3661_v49  ;;  %v1839_v62 = vadd.f32 %v2249_v18, %v1838_v60  ;;  %vm1856_vm13 = vweird.f32 %v2251_v29 }
 0x5f2   : > { %v1833_v57 = vsel %vm1830_vm14, %v1832_v21, %v1828_v8  ;;  %v2253_v61 = vpop.eup %2252  ;;  %vm1857_vm9 = vmor %vm1855_vm7, %vm1856_vm13  ;;  %vm1875_vm4 = vcmp.eq.f32.partialorder %v1874_v59, 8.507059e+37 }
 0x5f3   : > { %v1884_v19 = vmul.f32 %v2270_v42, %v1833_v57  ;;  %v1852_v26 = vsub.f32 1.0, %v1851_v1  ;;  %v1843_v16 = vsel %vm1842_vm6, %v2249_v18, %v1839_v62  ;;  %v1866_v25 = vmul.f32 %v2253_v61, %v3668_v27 }
 0x5f4   : > { %v1848_v48 = vsel %vm1845_vm3, %v1847_v34, %v1843_v16  ;;  %vm1871_vm11 = vweird.f32 %v2253_v61 }
 0x5f5   : > { %1892 = vst [vmem:[%s3643_s11 + $0x20] sm:$0xff] %v1884_v19  ;;  %v1853_v3 = vmul.f32 %v2251_v29, %v1852_v26  ;;  %v1885_v22 = vmul.f32 %v2271_v41, %v1848_v48  ;;  %v1867_v9 = vsub.f32 1.0, %v1866_v25  ;;  %vm1872_vm2 = vmor %vm1870_vm1, %vm1871_vm11 }
 0x5f7   : > { %v1854_v37 = vadd.f32 %v2251_v29, %v1853_v3  ;;  %1893 = vst [vmem:[%s3643_s11 + $0x28] sm:$0xff] %v1885_v22  ;;  %v1868_v35 = vmul.f32 %v2253_v61, %v1867_v9 }
 0x5f9   : > { %v1858_v15 = vsel %vm1857_vm9, %v2251_v29, %v1854_v37  ;;  %v1869_v12 = vadd.f32 %v2253_v61, %v1868_v35 }
 0x5fa   : > { %v1863_v32 = vsel %vm1860_vm10, %v1862_v45, %v1858_v15 }
 0x5fb   : > { %v1886_v31 = vmul.f32 %v2272_v20, %v1863_v32  ;;  %v1873_v17 = vsel %vm1872_vm2, %v2253_v61, %v1869_v12 }
 0x5fc   : > { %v1878_v10 = vsel %vm1875_vm4, %v1877_v24, %v1873_v17 }
 0x5fd   : > { %1894 = vst [vmem:[%s3643_s11 + $0x30] sm:$0xff] %v1886_v31  ;;  %v1887_v44 = vmul.f32 %v2273_v43, %v1878_v10 }
 0x5ff   : > { %1895 = vst [vmem:[%s3643_s11 + $0x38] sm:$0xff] %v1887_v44 }
 0x600 PF: > { %s17_s24 = sadd.s32 1, %s2280_s24  }
 0x601   : > { %p14_p4 = scmp.ge.s32.totalorder %s17_s24, 4  }
 0x603   :  { %16 = sbr.rel (!%p14_p4) target bundleno = 1 (0x1), region = 78 }

</bundles_post_ra>
